<compile_context>
chip_gen: v6e
topology: v6e:2x2x1
jax: 0.10.0
libtpu: 0.0.40
codegen_flags: <defaults>
</compile_context>

<pallas_src>
import functools

import jax
import jax.numpy as jnp
from jax.experimental import pallas as pl
from jax.experimental.pallas import tpu as pltpu

_MIB = 1024 * 1024
_INV_SQRT2 = 0.7071067811865476


def _round_up(a, b):
    return (a + b - 1) // b * b


def _gelu(x, exact):
    if exact:
        # PyTorch nn.GELU default: 0.5*x*(1+erf(x/sqrt(2)))
        return 0.5 * x * (1.0 + jax.lax.erf(x * _INV_SQRT2))
    # tanh approximation: transcendental goes to the EUP slot (cheap on all gens).
    return jax.nn.gelu(x, approximate=True)


def _ffn_kernel(x_ref, gamma_ref, beta_ref, w1_ref, w2_ref, o_ref, *,
                eps, matmul_dtype, exact_gelu):
    # One row-tile of the flattened token matrix: (tile_m, C)
    x = x_ref[...].astype(jnp.float32)

    # --- LayerNorm over channels (biased variance, eps matches nn.LayerNorm) ---
    mu = jnp.mean(x, axis=-1, keepdims=True)
    xc = x - mu
    var = jnp.mean(xc * xc, axis=-1, keepdims=True)
    inv = jax.lax.rsqrt(var + eps)
    xn = xc * inv * gamma_ref[...].astype(jnp.float32) + beta_ref[...].astype(jnp.float32)

    # --- Linear (C -> H), no bias: matmul_dtype operands on the MXU, f32 accumulation ---
    h = jnp.dot(xn.astype(matmul_dtype), w1_ref[...],
                preferred_element_type=jnp.float32)

    # --- GELU ---
    h = _gelu(h, exact_gelu)

    # --- Linear (H -> C), no bias ---
    y = jnp.dot(h.astype(matmul_dtype), w2_ref[...],
                preferred_element_type=jnp.float32)

    o_ref[...] = y.astype(o_ref.dtype)


def _ffn_jax(x2, gamma, beta, w1, w2, eps, matmul_dtype, exact_gelu, out_dtype):
    """Plain-XLA fallback for narrow-channel stages (same math as the kernel)."""
    xf = x2.astype(jnp.float32)
    mu = jnp.mean(xf, axis=-1, keepdims=True)
    var = jnp.mean((xf - mu) ** 2, axis=-1, keepdims=True)
    xn = (xf - mu) * jax.lax.rsqrt(var + eps) * gamma.astype(jnp.float32) \
        + beta.astype(jnp.float32)
    h = jnp.dot(xn.astype(matmul_dtype), w1.astype(matmul_dtype),
                preferred_element_type=jnp.float32)
    h = _gelu(h, exact_gelu)
    y = jnp.dot(h.astype(matmul_dtype), w2.astype(matmul_dtype),
                preferred_element_type=jnp.float32)
    return y.astype(out_dtype)


def _vmem_capacity_bytes():
    try:
        info = pltpu.get_tpu_info()
        return int(getattr(info, "vmem_capacity_bytes", 64 * _MIB))
    except Exception:
        return 64 * _MIB  # conservative (v7x-sized) fallback


def feed_forward(x, gamma, beta, w1, w2, *, eps=1e-5, tile_m=None,
                 matmul_dtype=jnp.bfloat16, exact_gelu=None, out_dtype=None,
                 vmem_budget_bytes=None, min_grid_steps=4):
    """x: (..., C) channels-last.  Returns same leading shape with C channels.

    gamma/beta: (C,) LayerNorm affine params.
    w1: (C, H), w2: (H, C) -- transposed nn.Linear weights so the kernel does x @ W.
    matmul_dtype: operand dtype fed to the MXU (accumulation is always f32).
    exact_gelu: None -> exact erf only for the f32 precision path, tanh-approx otherwise.
    out_dtype: output dtype (defaults to x.dtype; pass bf16 for bf16 pipelines).
    """
    orig_shape = x.shape
    C = orig_shape[-1]
    H = w1.shape[1]
    if out_dtype is None:
        out_dtype = x.dtype
    if exact_gelu is None:
        exact_gelu = (jnp.dtype(matmul_dtype) == jnp.dtype(jnp.float32))

    x2 = x.reshape(-1, C)
    M = x2.shape[0]

    # Narrow-channel stages: masked partial stores + mostly-idle MXU -> let XLA fuse.
    if C < 128 or M < 8:
        out = _ffn_jax(x2, gamma, beta, w1, w2, eps, matmul_dtype, exact_gelu, out_dtype)
        return out.reshape(orig_shape[:-1] + (C,))

    # Pre-cast resident weights once (halves their VMEM/DMA footprint for bf16).
    w1 = w1.astype(matmul_dtype)
    w2 = w2.astype(matmul_dtype)
    gamma2 = gamma.reshape(1, C).astype(jnp.float32)
    beta2 = beta.reshape(1, C).astype(jnp.float32)

    # ---- generation-aware VMEM budget / compiler limit ----
    vmem_cap = _vmem_capacity_bytes()
    big_vmem = vmem_cap >= 100 * _MIB          # v5e / v6e (128 MiB) vs v7x (64 MiB)
    if vmem_budget_bytes is None:
        vmem_budget_bytes = 80 * _MIB if big_vmem else 28 * _MIB
    limit_cap = 100 * _MIB if big_vmem else 40 * _MIB

    # ---- pick tile_m ----
    if tile_m is None:
        tile_m = 512  # roofline-friendly default
    # Guarantee at least min_grid_steps (roughly even) grid steps so both v7x cores
    # get work and the double-buffer pipeline is actually primed.
    if M >= 8 * max(min_grid_steps, 1):
        tile_m = min(tile_m, _round_up(pl.cdiv(M, min_grid_steps), 8))

    w_itemsize = jnp.dtype(matmul_dtype).itemsize
    x_itemsize = jnp.dtype(x2.dtype).itemsize
    o_itemsize = jnp.dtype(out_dtype).itemsize
    # Weights assumed double-buffered by the pipeline (conservative) + LN params.
    w_bytes = 2 * (2 * C * H) * w_itemsize + 4 * C * 4

    def _tile_bytes(tm):
        io = 2 * tm * C * (x_itemsize + o_itemsize)   # double-buffered x-in + out tiles
        f32_work = tm * (3 * C + 2 * H) * 4           # x, xn, y (C-wide) + h, gelu tmp (H-wide)
        return io + f32_work

    while tile_m > 8 and w_bytes + _tile_bytes(tile_m) > vmem_budget_bytes:
        tile_m //= 2
    tile_m = max(8, min(_round_up(tile_m, 8), _round_up(M, 8)))

    # ---- pad rows so M is a multiple of tile_m (padded rows are discarded) ----
    Mp = _round_up(M, tile_m)
    if Mp != M:
        x2 = jnp.pad(x2, ((0, Mp - M), (0, 0)))

    est_bytes = w_bytes + _tile_bytes(tile_m)
    vmem_limit = int(min(max(2 * est_bytes, 32 * _MIB), limit_cap))

    grid = (Mp // tile_m,)
    out = pl.pallas_call(
        functools.partial(_ffn_kernel, eps=eps, matmul_dtype=matmul_dtype,
                          exact_gelu=exact_gelu),
        out_shape=jax.ShapeDtypeStruct((Mp, C), out_dtype),
        grid=grid,
        in_specs=[
            pl.BlockSpec((tile_m, C), lambda i: (i, 0)),   # x row-tile
            pl.BlockSpec((1, C), lambda i: (0, 0)),        # LayerNorm gamma (resident)
            pl.BlockSpec((1, C), lambda i: (0, 0)),        # LayerNorm beta  (resident)
            pl.BlockSpec((C, H), lambda i: (0, 0)),        # W1 (C -> H), resident
            pl.BlockSpec((H, C), lambda i: (0, 0)),        # W2 (H -> C), resident
        ],
        out_specs=pl.BlockSpec((tile_m, C), lambda i: (i, 0)),
        compiler_params=pltpu.CompilerParams(
            dimension_semantics=("parallel",),
            vmem_limit_bytes=vmem_limit,
        ),
    )(x2, gamma2, beta2, w1, w2)

    if Mp != M:
        out = out[:M]
    return out.reshape(orig_shape[:-1] + (C,))


# ----------------------------- self-test -----------------------------

def _reference(x, gamma, beta, w1, w2, eps=1e-5, matmul_dtype=jnp.float32,
               exact_gelu=True, out_dtype=None):
    if out_dtype is None:
        out_dtype = x.dtype
    xf = x.astype(jnp.float32)
    mu = jnp.mean(xf, axis=-1, keepdims=True)
    var = jnp.mean((xf - mu) ** 2, axis=-1, keepdims=True)
    xn = (xf - mu) * jax.lax.rsqrt(var + eps) * gamma.astype(jnp.float32) \
        + beta.astype(jnp.float32)
    h = jnp.dot(xn.astype(matmul_dtype), w1.astype(matmul_dtype),
                preferred_element_type=jnp.float32)
    h = _gelu(h, exact_gelu)
    y = jnp.dot(h.astype(matmul_dtype), w2.astype(matmul_dtype),
                preferred_element_type=jnp.float32)
    return y.astype(out_dtype)


def _allclose(a, b, atol, rtol):
    return bool(jnp.allclose(a.astype(jnp.float32), b.astype(jnp.float32),
                             atol=atol, rtol=rtol))


def _make_params(key, C, H, dtype=jnp.float32):
    kw1, kw2 = jax.random.split(key, 2)
    gamma = jnp.ones((C,), dtype=dtype)
    beta = jnp.zeros((C,), dtype=dtype)
    # nn.Linear weight is (out, in); we store the transposed (in, out) layout.
    w1 = jax.random.normal(kw1, (C, H), dtype=dtype) * (1.0 / jnp.sqrt(C))
    w2 = jax.random.normal(kw2, (H, C), dtype=dtype) * (1.0 / jnp.sqrt(H))
    return gamma, beta, w1, w2


if __name__ == "__main__":
    key = jax.random.PRNGKey(0)
    k1, k2, k3, k4, k5 = jax.random.split(key, 5)

    # --- Case A: CoatNet transformer-stage shape (stage 3 FFN): C=192, H=384,
    #     B=2, 14x14 spatial -> N=196 (M=392; exercises row padding & >=4 grid steps).
    B, N, C, H = 2, 196, 192, 384
    x = jax.random.normal(k1, (B, N, C), dtype=jnp.float32)
    gamma, beta, w1, w2 = _make_params(k2, C, H)

    # A1: f32 precision path (exact erf GELU) -- tight check vs exact reference.
    out_f32 = jax.block_until_ready(
        feed_forward(x, gamma, beta, w1, w2, matmul_dtype=jnp.float32))
    ref_f32 = _reference(x, gamma, beta, w1, w2, matmul_dtype=jnp.float32, exact_gelu=True)
    assert out_f32.shape == x.shape and out_f32.dtype == x.dtype
    assert _allclose(out_f32, ref_f32, 2e-4, 2e-4), "f32 path mismatch"

    # A2: default fast path (bf16 MXU operands, tanh-approx GELU).
    out_fast = jax.block_until_ready(feed_forward(x, gamma, beta, w1, w2))
    ref_fast = _reference(x, gamma, beta, w1, w2, matmul_dtype=jnp.bfloat16, exact_gelu=False)
    assert out_fast.shape == x.shape and out_fast.dtype == x.dtype
    assert _allclose(out_fast, ref_fast, 2e-2, 2e-2), "bf16 fast path mismatch"
    assert _allclose(out_fast, ref_f32, 1e-1, 1e-1), "bf16 fast path drift vs exact"

    # --- Case B: bf16 activation I/O, deeper-stage shape: C=384, H=768,
    #     B=2, 7x7 spatial -> N=49 (M=98).
    B2, N2, C2, H2 = 2, 49, 384, 768
    xb = jax.random.normal(k3, (B2, N2, C2), dtype=jnp.float32).astype(jnp.bfloat16)
    gamma2, beta2, w1b, w2b = _make_params(k4, C2, H2)
    out_bf = jax.block_until_ready(
        feed_forward(xb, gamma2, beta2, w1b, w2b, out_dtype=jnp.bfloat16))
    ref_bf = _reference(xb, gamma2, beta2, w1b, w2b, matmul_dtype=jnp.bfloat16,
                        exact_gelu=False, out_dtype=jnp.bfloat16)
    assert out_bf.shape == xb.shape and out_bf.dtype == jnp.bfloat16
    assert _allclose(out_bf, ref_bf, 5e-2, 5e-2), "bf16 I/O path mismatch"

    # --- Case C: module-default narrow stage (C=32 -> H=32//4=8): dispatched to the
    #     XLA fallback path (C < 128), semantics still checked.
    B3, N3, C3, H3 = 2, 64, 32, 8
    xn_ = jax.random.normal(k5, (B3, N3, C3), dtype=jnp.float32)
    gamma3, beta3, w13, w23 = _make_params(k5, C3, H3)
    out_n = jax.block_until_ready(
        feed_forward(xn_, gamma3, beta3, w13, w23, matmul_dtype=jnp.float32))
    ref_n = _reference(xn_, gamma3, beta3, w13, w23, matmul_dtype=jnp.float32, exact_gelu=True)
    assert out_n.shape == xn_.shape
    assert _allclose(out_n, ref_n, 2e-4, 2e-4), "narrow-C fallback mismatch"

    print("KERNEL_OK")
</pallas_src>

<mosaic_0001>
module attributes {stable_mosaic.version = 11 : i64} {
  func.func @_ffn_kernel(%arg0: i32, %arg1: memref<104x192xf32, #tpu.memory_space<vmem>>, %arg2: memref<1x192xf32, #tpu.memory_space<vmem>>, %arg3: memref<1x192xf32, #tpu.memory_space<vmem>>, %arg4: memref<192x384xf32, #tpu.memory_space<vmem>>, %arg5: memref<384x192xf32, #tpu.memory_space<vmem>>, %arg6: memref<104x192xf32, #tpu.memory_space<vmem>>) attributes {dimension_semantics = [#tpu.dimension_semantics<parallel>], iteration_bounds = array<i64: 4>, scalar_prefetch = 0 : i64, scratch_operands = 0 : i64, tpu.core_type = #tpu.core_type<tc>, window_params = [{transform_indices = @transform_0, window_bounds = array<i64: 104, 192>}, {pipeline_mode = #tpu.pipeline_mode<synchronous>, transform_indices = @transform_1, window_bounds = array<i64: 1, 192>}, {pipeline_mode = #tpu.pipeline_mode<synchronous>, transform_indices = @transform_2, window_bounds = array<i64: 1, 192>}, {pipeline_mode = #tpu.pipeline_mode<synchronous>, transform_indices = @transform_3, window_bounds = array<i64: 192, 384>}, {pipeline_mode = #tpu.pipeline_mode<synchronous>, transform_indices = @transform_4, window_bounds = array<i64: 384, 192>}, {transform_indices = @transform_5, window_bounds = array<i64: 104, 192>}]} {
    %c0 = arith.constant 0 : index
    %c0_0 = arith.constant 0 : index
    %0 = vector.load %arg1[%c0, %c0_0] : memref<104x192xf32, #tpu.memory_space<vmem>>, vector<104x192xf32>
    %cst = arith.constant dense<0.000000e+00> : vector<104xf32>
    %1 = vector.multi_reduction <add>, %0, %cst [1] : vector<104x192xf32> to vector<104xf32>
    %2 = vector.shape_cast %1 : vector<104xf32> to vector<104x1xf32>
    %cst_1 = arith.constant 1.920000e+02 : f32
    %3 = vector.broadcast %cst_1 : f32 to vector<104x1xf32>
    %4 = arith.divf %2, %3 : vector<104x1xf32>
    %5 = vector.broadcast %4 : vector<104x1xf32> to vector<104x192xf32>
    %6 = arith.subf %0, %5 : vector<104x192xf32>
    %7 = arith.mulf %6, %6 : vector<104x192xf32>
    %cst_2 = arith.constant dense<0.000000e+00> : vector<104xf32>
    %8 = vector.multi_reduction <add>, %7, %cst_2 [1] : vector<104x192xf32> to vector<104xf32>
    %9 = vector.shape_cast %8 : vector<104xf32> to vector<104x1xf32>
    %cst_3 = arith.constant 1.920000e+02 : f32
    %10 = vector.broadcast %cst_3 : f32 to vector<104x1xf32>
    %11 = arith.divf %9, %10 : vector<104x1xf32>
    %cst_4 = arith.constant 9.99999974E-6 : f32
    %12 = vector.broadcast %cst_4 : f32 to vector<104x1xf32>
    %13 = arith.addf %11, %12 : vector<104x1xf32>
    %14 = math.rsqrt %13 : vector<104x1xf32>
    %15 = vector.broadcast %14 : vector<104x1xf32> to vector<104x192xf32>
    %16 = arith.mulf %6, %15 : vector<104x192xf32>
    %c0_5 = arith.constant 0 : index
    %c0_6 = arith.constant 0 : index
    %17 = vector.load %arg2[%c0_5, %c0_6] : memref<1x192xf32, #tpu.memory_space<vmem>>, vector<1x192xf32>
    %18 = vector.broadcast %17 : vector<1x192xf32> to vector<104x192xf32>
    %19 = arith.mulf %16, %18 : vector<104x192xf32>
    %c0_7 = arith.constant 0 : index
    %c0_8 = arith.constant 0 : index
    %20 = vector.load %arg3[%c0_7, %c0_8] : memref<1x192xf32, #tpu.memory_space<vmem>>, vector<1x192xf32>
    %21 = vector.broadcast %20 : vector<1x192xf32> to vector<104x192xf32>
    %22 = arith.addf %19, %21 : vector<104x192xf32>
    %c0_9 = arith.constant 0 : index
    %c0_10 = arith.constant 0 : index
    %23 = vector.load %arg4[%c0_9, %c0_10] : memref<192x384xf32, #tpu.memory_space<vmem>>, vector<192x384xf32>
    %cst_11 = arith.constant dense<0.000000e+00> : vector<104x384xf32>
    %24 = tpu.matmul %22, %23, %cst_11 {dimension_numbers = #tpu.dot_dimension_numbers<[1], [0], [0], [1], [0, 0, 1, 1], [], []>} : vector<104x192xf32>, vector<192x384xf32>, vector<104x384xf32> -> vector<104x384xf32>
    %cst_12 = arith.constant 5.000000e-01 : f32
    %25 = vector.broadcast %cst_12 : f32 to vector<104x384xf32>
    %26 = arith.mulf %25, %24 : vector<104x384xf32>
    %cst_13 = arith.constant 0.707106769 : f32
    %27 = vector.broadcast %cst_13 : f32 to vector<104x384xf32>
    %28 = arith.mulf %24, %27 : vector<104x384xf32>
    %29 = math.erf %28 : vector<104x384xf32>
    %cst_14 = arith.constant 1.000000e+00 : f32
    %30 = vector.broadcast %cst_14 : f32 to vector<104x384xf32>
    %31 = arith.addf %30, %29 : vector<104x384xf32>
    %32 = arith.mulf %26, %31 : vector<104x384xf32>
    %c0_15 = arith.constant 0 : index
    %c0_16 = arith.constant 0 : index
    %33 = vector.load %arg5[%c0_15, %c0_16] : memref<384x192xf32, #tpu.memory_space<vmem>>, vector<384x192xf32>
    %cst_17 = arith.constant dense<0.000000e+00> : vector<104x192xf32>
    %34 = tpu.matmul %32, %33, %cst_17 {dimension_numbers = #tpu.dot_dimension_numbers<[1], [0], [0], [1], [0, 0, 1, 1], [], []>} : vector<104x384xf32>, vector<384x192xf32>, vector<104x192xf32> -> vector<104x192xf32>
    %c0_18 = arith.constant 0 : index
    %c0_19 = arith.constant 0 : index
    %35 = vector.load %arg6[%c0_18, %c0_19] : memref<104x192xf32, #tpu.memory_space<vmem>>, vector<104x192xf32>
    tpu.vector_store %arg6[%c0_18, %c0_19], %34 {strides = array<i32>} : memref<104x192xf32, #tpu.memory_space<vmem>>, vector<104x192xf32>,
    return
  }
  func.func @transform_0(%arg0: i32) -> (i32, i32) {
    %c0_i32 = arith.constant 0 : i32
    %c0_i32_0 = arith.constant 0 : i32
    return %arg0, %c0_i32 : i32, i32
  }
  func.func @transform_1(%arg0: i32) -> (i32, i32) {
    %c0_i32 = arith.constant 0 : i32
    %c0_i32_0 = arith.constant 0 : i32
    %c0_i32_1 = arith.constant 0 : i32
    return %c0_i32, %c0_i32_0 : i32, i32
  }
  func.func @transform_2(%arg0: i32) -> (i32, i32) {
    %c0_i32 = arith.constant 0 : i32
    %c0_i32_0 = arith.constant 0 : i32
    %c0_i32_1 = arith.constant 0 : i32
    return %c0_i32, %c0_i32_0 : i32, i32
  }
  func.func @transform_3(%arg0: i32) -> (i32, i32) {
    %c0_i32 = arith.constant 0 : i32
    %c0_i32_0 = arith.constant 0 : i32
    %c0_i32_1 = arith.constant 0 : i32
    return %c0_i32, %c0_i32_0 : i32, i32
  }
  func.func @transform_4(%arg0: i32) -> (i32, i32) {
    %c0_i32 = arith.constant 0 : i32
    %c0_i32_0 = arith.constant 0 : i32
    %c0_i32_1 = arith.constant 0 : i32
    return %c0_i32, %c0_i32_0 : i32, i32
  }
  func.func @transform_5(%arg0: i32) -> (i32, i32) {
    %c0_i32 = arith.constant 0 : i32
    %c0_i32_0 = arith.constant 0 : i32
    return %arg0, %c0_i32 : i32, i32
  }
}

</mosaic_0001>

<bundles_post_ra>
// kernel: tpu_custom_call.1
= control target key start
LH: loop header
LB: loop body
LE: loop exit
PB: predicated region body
PF: predicated region fallthrough
CT: control target
= control target key end

     0   :  { %s1807_s18 = smov 0   ;;  %s2933_s0 = inlined_call_operand.vmem [shape: f32[416,192], index: 0, kind: input, shape index: {}]   ;;  %s2934_s1 = inlined_call_operand.vmem [shape: f32[1,192], index: 1, kind: input, shape index: {}]   ;;  %s2935_s2 = inlined_call_operand.vmem [shape: f32[1,192], index: 2, kind: input, shape index: {}]   ;;  %s2936_s3 = inlined_call_operand.vmem [shape: f32[192,384], index: 3, kind: input, shape index: {}]   ;;  %s2937_s4 = inlined_call_operand.vmem [shape: f32[384,192], index: 4, kind: input, shape index: {}]   ;;  %s2938_s5 = inlined_call_operand.vmem [shape: f32[416,192], index: 5, kind: output, shape index: {}]  }
   0x1 LB: > { %s1616_s19 = sadd.s32 4294967295, %s1774_s18   ;;  %p1620_p0 = scmp.ge.s32.totalorder %s1774_s18, 1  ;;  %s1774_s18 = sphi %s1807_s18, %s15_s18  }
   0x2   : > { %p189_p1 = scmp.lt.s32.totalorder %s1774_s18, 5 }
   0x4   : > { %p190_p2 = pnand %p1620_p0, %p189_p1 }
   0x5   : > { %s219_s20 = smul.u32 (!%p190_p2), 13, %s1616_s19 }
   0x6   : > { %193 = sbr.rel (%p190_p2) target bundleno = 791 (0x317), region = 40 }
   0x7   : > { %p220_p3 = scmp.lt.s32.totalorder (!%p190_p2), %s219_s20, 51 }
   0xb   : > { %s2940_s20 = smov (!%p220_p3, %s219_s20), 51  ;;  %vm259_vm0 = vcmask 523264   ;;  %v617_v52 = vld [vmem:[%s2936_s3 + $0x170] sm:$0xff]  ;;  %v616_v53 = vld [vmem:[%s2936_s3 + $0x168] sm:$0xff]  ;;  %v618_v54 = vld [vmem:[%s2936_s3 + $0x178] sm:$0xff]  ;;  %v1776_v55 = vmov 0.0  }
   0xc   : > { %s1653_s21 = sshll.u32 %s2940_s20, 4  ;;  %682 = vmatprep.subr.mxu0 %v617_v52  ;;  %825 = vmatprep.subr.mxu1 %v1776_v55  ;;  %v614_v56 = vld [vmem:[%s2936_s3 + $0x158] sm:$0xff]  ;;  %v613_v57 = vld [vmem:[%s2936_s3 + $0x150] sm:$0xff]  ;;  %v615_v58 = vld [vmem:[%s2936_s3 + $0x160] sm:$0xff] }
   0xd   : > { %s1823_s24 = scalar_lea.vmem %s2933_s0, %s1653_s21  ;;  %683 = vmatpush1.msra.mxu0 %v616_v53  ;;  %826 = vmatpush1.msra.mxu1 %v618_v54  ;;  %v611_v59 = vld [vmem:[%s2936_s3 + $0x140] sm:$0xff]  ;;  %v610_v60 = vld [vmem:[%s2936_s3 + $0x138] sm:$0xff]  ;;  %v612_v61 = vld [vmem:[%s2936_s3 + $0x148] sm:$0xff]  ;;  %s2889_s12 = scalar_lea.vmem %s2938_s5, %s1653_s21 }
   0xe   : > { %v1826_v0 = vld [vmem:[%s1823_s24] sm:$0xff]  ;;  %v1829_v1 = vld [vmem:[%s1823_s24 + $0x8] sm:$0xff]  ;;  %v1840_v5 = vld [vmem:[%s1823_s24 + $0x10] sm:$0xff]  ;;  %684 = vmatprep.subr.mxu0 %v614_v56  ;;  %827 = vmatprep.subr.mxu1 %v1776_v55 }
   0xf   : > { %v1832_v2 = vld [vmem:[%s1823_s24 + $0x20] sm:$0xff]  ;;  %v260_v3 = vsel %vm259_vm0, %v1829_v1, 0.0  ;;  %v1837_v4 = vld [vmem:[%s1823_s24 + $0x28] sm:$0xff]  ;;  %v1843_v6 = vld [vmem:[%s1823_s24 + $0x18] sm:$0xff]  ;;  %685 = vmatpush1.msra.mxu0 %v613_v57  ;;  %828 = vmatpush1.msra.mxu1 %v615_v58 }
  0x10   : > { %v261_v7 = vadd.f32 %v260_v3, %v1826_v0  ;;  %v268_v8 = vsel %vm259_vm0, %v1837_v4, 0.0  ;;  %v264_v9 = vsel %vm259_vm0, %v1843_v6, 0.0  ;;  %v1851_v10 = vld [vmem:[%s1823_s24 + $0x30] sm:$0xff]  ;;  %v1854_v11 = vld [vmem:[%s1823_s24 + $0x38] sm:$0xff]  ;;  %v1860_v14 = vld [vmem:[%s1823_s24 + $0x48] sm:$0xff]  ;;  %686 = vmatprep.subr.mxu0 %v611_v59  ;;  %829 = vmatprep.subr.mxu1 %v1776_v55 }
  0x11   : > { %v269_v12 = vadd.f32 %v268_v8, %v1832_v2  ;;  %v272_v13 = vsel %vm259_vm0, %v1854_v11, 0.0  ;;  %v1863_v15 = vld [vmem:[%s1823_s24 + $0x58] sm:$0xff]  ;;  %v265_v16 = vadd.f32 %v264_v9, %v1840_v5  ;;  %v1868_v18 = vld [vmem:[%s1823_s24 + $0x40] sm:$0xff]  ;;  %v276_v19 = vsel %vm259_vm0, %v1860_v14, 0.0  ;;  %v1873_v20 = vld [vmem:[%s1823_s24 + $0x50] sm:$0xff]  ;;  %687 = vmatpush1.msra.mxu0 %v610_v60  ;;  %830 = vmatpush1.msra.mxu1 %v612_v61 }
  0x12   : > { %262 = vadd.xlane.f32.xlu0 %v261_v7  ;;  %v273_v17 = vadd.f32 %v272_v13, %v1851_v10  ;;  %v280_v21 = vsel %vm259_vm0, %v1863_v15, 0.0  ;;  %v1878_v22 = vld [vmem:[%s1823_s24 + $0x68] sm:$0xff]  ;;  %v1881_v23 = vld [vmem:[%s1823_s24 + $0x78] sm:$0xff]  ;;  %v277_v24 = vadd.f32 %v276_v19, %v1868_v18  ;;  %v1886_v26 = vld [vmem:[%s1823_s24 + $0x60] sm:$0xff]  ;;  %831 = vmatprep.subr.mxu1 %v1776_v55 }
  0x13   : > { %270 = vadd.xlane.f32.xlu1 %v269_v12  ;;  %v281_v25 = vadd.f32 %v280_v21, %v1873_v20  ;;  %v284_v27 = vsel %vm259_vm0, %v1878_v22, 0.0  ;;  %v1891_v28 = vld [vmem:[%s1823_s24 + $0x70] sm:$0xff]  ;;  %v288_v29 = vsel %vm259_vm0, %v1881_v23, 0.0  ;;  %v1896_v30 = vld [vmem:[%s1823_s24 + $0x88] sm:$0xff]  ;;  %v1899_v31 = vld [vmem:[%s1823_s24 + $0x98] sm:$0xff] }
  0x14   : > { %v285_v32 = vadd.f32 %v284_v27, %v1886_v26  ;;  %v289_v33 = vadd.f32 %v288_v29, %v1891_v28  ;;  %v1904_v34 = vld [vmem:[%s1823_s24 + $0x80] sm:$0xff]  ;;  %v292_v35 = vsel %vm259_vm0, %v1896_v30, 0.0  ;;  %v1909_v36 = vld [vmem:[%s1823_s24 + $0x90] sm:$0xff]  ;;  %v296_v37 = vsel %vm259_vm0, %v1899_v31, 0.0  ;;  %v1914_v38 = vld [vmem:[%s1823_s24 + $0xa8] sm:$0xff] }
  0x15   : > { %v1917_v39 = vld [vmem:[%s1823_s24 + $0xb8] sm:$0xff]  ;;  %v293_v40 = vadd.f32 %v292_v35, %v1904_v34  ;;  %v297_v41 = vadd.f32 %v296_v37, %v1909_v36  ;;  %v1922_v42 = vld [vmem:[%s1823_s24 + $0xa0] sm:$0xff]  ;;  %v300_v43 = vsel %vm259_vm0, %v1914_v38, 0.0  ;;  %v1927_v44 = vld [vmem:[%s1823_s24 + $0xb0] sm:$0xff] }
  0x16   : > { %266 = vadd.xlane.f32.xlu0 %v265_v16  ;;  %v304_v45 = vsel %vm259_vm0, %v1917_v39, 0.0  ;;  %v1932_v46 = vld [vmem:[%s1823_s24 + $0xc8] sm:$0xff]  ;;  %v301_v47 = vadd.f32 %v300_v43, %v1922_v42  ;;  %v1937_v49 = vld [vmem:[%s1823_s24 + $0xc0] sm:$0xff]  ;;  %v609_v3 = vld [vmem:[%s2936_s3 + $0x130] sm:$0xff] }
  0x17   : > { %274 = vadd.xlane.f32.xlu1 %v273_v17  ;;  %v305_v48 = vadd.f32 %v304_v45, %v1927_v44  ;;  %v308_v50 = vsel %vm259_vm0, %v1932_v46, 0.0  ;;  %v608_v62 = vld [vmem:[%s2936_s3 + $0x128] sm:$0xff]  ;;  %v607_v63 = vld [vmem:[%s2936_s3 + $0x120] sm:$0xff]  ;;  %v605_v7 = vld [vmem:[%s2936_s3 + $0x110] sm:$0xff]  ;;  %832 = vmatpush1.msra.mxu1 %v609_v3 }
  0x18   : > { %v309_v51 = vadd.f32 %v308_v50, %v1937_v49  ;;  %688 = vmatprep.subr.mxu0 %v608_v62  ;;  %v604_v8 = vld [vmem:[%s2936_s3 + $0x108] sm:$0xff]  ;;  %v606_v9 = vld [vmem:[%s2936_s3 + $0x118] sm:$0xff]  ;;  %833 = vmatprep.subr.mxu1 %v1776_v55  ;;  %v601_v13 = vld [vmem:[%s2936_s3 + $0xf0] sm:$0xff] }
  0x19   : > { %689 = vmatpush1.msra.mxu0 %v607_v63  ;;  %v602_v12 = vld [vmem:[%s2936_s3 + $0xf8] sm:$0xff]  ;;  %v603_v16 = vld [vmem:[%s2936_s3 + $0x100] sm:$0xff]  ;;  %834 = vmatpush1.msra.mxu1 %v606_v9  ;;  %v600_v21 = vld [vmem:[%s2936_s3 + $0xe8] sm:$0xff] }
  0x1a   : > { %278 = vadd.xlane.f32.xlu0 %v277_v24  ;;  %690 = vmatprep.subr.mxu0 %v605_v7  ;;  %v599_v17 = vld [vmem:[%s2936_s3 + $0xe0] sm:$0xff]  ;;  %v598_v19 = vld [vmem:[%s2936_s3 + $0xd8] sm:$0xff]  ;;  %v596_v24 = vld [vmem:[%s2936_s3 + $0xc8] sm:$0xff] }
  0x1b   : > { %282 = vadd.xlane.f32.xlu1 %v281_v25  ;;  %691 = vmatpush1.msra.mxu0 %v604_v8  ;;  %v595_v25 = vld [vmem:[%s2936_s3 + $0xc0] sm:$0xff]  ;;  %v597_v27 = vld [vmem:[%s2936_s3 + $0xd0] sm:$0xff]  ;;  %v590_v35 = vld [vmem:[%s2936_s3 + $0x98] sm:$0xff] }
  0x1c   : > { %692 = vmatprep.subr.mxu0 %v602_v12  ;;  %835 = vmatprep.subr.mxu1 %v1776_v55  ;;  %v593_v29 = vld [vmem:[%s2936_s3 + $0xb0] sm:$0xff]  ;;  %v586_v43 = vld [vmem:[%s2936_s3 + $0x78] sm:$0xff]  ;;  %v588_v45 = vld [vmem:[%s2936_s3 + $0x88] sm:$0xff] }
  0x1d   : > { %693 = vmatpush1.msra.mxu0 %v601_v13  ;;  %836 = vmatpush1.msra.mxu1 %v603_v16  ;;  %v589_v37 = vld [vmem:[%s2936_s3 + $0x90] sm:$0xff] }
  0x1e   : > { %286 = vadd.xlane.f32.xlu0 %v285_v32  ;;  %694 = vmatprep.subr.mxu0 %v599_v17  ;;  %v592_v32 = vld [vmem:[%s2936_s3 + $0xa8] sm:$0xff] }
  0x1f   : > { %290 = vadd.xlane.f32.xlu1 %v289_v33  ;;  %837 = vmatprep.subr.mxu1 %v1776_v55  ;;  %v594_v33 = vld [vmem:[%s2936_s3 + $0xb8] sm:$0xff] }
  0x20   : > { %695 = vmatpush1.msra.mxu0 %v598_v19  ;;  %838 = vmatpush1.msra.mxu1 %v600_v21 }
  0x21   : > { %696 = vmatprep.subr.mxu0 %v596_v24  ;;  %839 = vmatprep.subr.mxu1 %v1776_v55 }
  0x22   : > { %294 = vadd.xlane.f32.xlu0 %v293_v40  ;;  %697 = vmatpush1.msra.mxu0 %v595_v25  ;;  %v591_v40 = vld [vmem:[%s2936_s3 + $0xa0] sm:$0xff] }
  0x23   : > { %298 = vadd.xlane.f32.xlu1 %v297_v41  ;;  %840 = vmatpush1.msra.mxu1 %v597_v27  ;;  %v587_v41 = vld [vmem:[%s2936_s3 + $0x80] sm:$0xff] }
  0x24   : > { %698 = vmatprep.subr.mxu0 %v593_v29  ;;  %841 = vmatprep.subr.mxu1 %v1776_v55 }
  0x25   : > { %699 = vmatpush1.msra.mxu0 %v592_v32  ;;  %842 = vmatpush1.msra.mxu1 %v594_v33 }
  0x26   : > { %302 = vadd.xlane.f32.xlu0 %v301_v47  ;;  %700 = vmatprep.subr.mxu0 %v590_v35  ;;  %v584_v47 = vld [vmem:[%s2936_s3 + $0x68] sm:$0xff] }
  0x27   : > { %306 = vadd.xlane.f32.xlu1 %v305_v48  ;;  %843 = vmatprep.subr.mxu1 %v1776_v55 }
  0x28   : > { %701 = vmatpush1.msra.mxu0 %v589_v37  ;;  %844 = vmatpush1.msra.mxu1 %v591_v40 }
  0x29   : > { %702 = vmatprep.subr.mxu0 %v587_v41  ;;  %845 = vmatprep.subr.mxu1 %v1776_v55 }
  0x2a   : > { %310 = vadd.xlane.f32.xlu0 %v309_v51  ;;  %703 = vmatpush1.msra.mxu0 %v586_v43 }
  0x2b   : > { %846 = vmatpush1.msra.mxu1 %v588_v45  ;;  %704 = vmatprep.subr.mxu0 %v584_v47 }
  0x2c   : > { %847 = vmatprep.subr.mxu1 %v1776_v55 }
  0x9b   : > { %v263_v48 = vpop.xlane.xlu0 %262 }
  0x9c   : > { %v313_v50 = vmul.f32 0.0052083335, %v263_v48  ;;  %v271_v51 = vpop.xlane.xlu1 %270 }
  0x9d   : > { %v315_v52 = vmul.f32 0.0052083335, %v271_v51 }
  0x9e   : > { %v2057_v53 = vsub.f32 %v1826_v0, %v313_v50  ;;  %v2060_v54 = vsub.f32 %v1829_v1, %v313_v50 }
  0x9f   : > { %v2063_v56 = vsub.f32 %v1832_v2, %v315_v52  ;;  %v2066_v57 = vsub.f32 %v1837_v4, %v315_v52  ;;  %v267_v58 = vpop.xlane.xlu0 %266 }
  0xa0   : > { %v314_v59 = vmul.f32 0.0052083335, %v267_v58  ;;  %v275_v60 = vpop.xlane.xlu1 %274  ;;  %v352_v61 = vmul.f32 %v2057_v53, %v2057_v53  ;;  %v353_v62 = vmul.f32 %v2060_v54, %v2060_v54 }
  0xa1   : > { %v316_v0 = vmul.f32 0.0052083335, %v275_v60  ;;  %v356_v1 = vmul.f32 %v2063_v56, %v2063_v56  ;;  %v357_v2 = vmul.f32 %v2066_v57, %v2066_v57 }
  0xa2   : > { %v2077_v63 = vsub.f32 %v1840_v5, %v314_v59  ;;  %v2080_v4 = vsub.f32 %v1843_v6, %v314_v59  ;;  %v378_v3 = vsel %vm259_vm0, %v353_v62, 0.0 }
  0xa3   : > { %v2084_v7 = vsub.f32 %v1851_v10, %v316_v0  ;;  %v2087_v8 = vsub.f32 %v1854_v11, %v316_v0  ;;  %v279_v9 = vpop.xlane.xlu0 %278  ;;  %v379_v12 = vadd.f32 %v378_v3, %v352_v61  ;;  %v386_v13 = vsel %vm259_vm0, %v357_v2, 0.0 }
  0xa4   : > { %v317_v16 = vmul.f32 0.0052083335, %v279_v9  ;;  %v283_v17 = vpop.xlane.xlu1 %282  ;;  %v354_v5 = vmul.f32 %v2077_v63, %v2077_v63  ;;  %v355_v6 = vmul.f32 %v2080_v4, %v2080_v4  ;;  %v387_v21 = vadd.f32 %v386_v13, %v356_v1  ;;  %v585_v13 = vld [vmem:[%s2936_s3 + $0x70] sm:$0xff] }
  0xa5   : > { %380 = vadd.xlane.f32.xlu1 %v379_v12  ;;  %v318_v19 = vmul.f32 0.0052083335, %v283_v17  ;;  %v358_v10 = vmul.f32 %v2084_v7, %v2084_v7  ;;  %v359_v11 = vmul.f32 %v2087_v8, %v2087_v8  ;;  %v583_v12 = vld [vmem:[%s2936_s3 + $0x60] sm:$0xff]  ;;  %848 = vmatpush1.msra.mxu1 %v585_v13 }
  0xa6   : > { %v2099_v24 = vsub.f32 %v1868_v18, %v317_v16  ;;  %v2102_v25 = vsub.f32 %v1860_v14, %v317_v16  ;;  %v382_v27 = vsel %vm259_vm0, %v355_v6, 0.0  ;;  %705 = vmatpush1.msra.mxu0 %v583_v12  ;;  %v581_v6 = vld [vmem:[%s2936_s3 + $0x50] sm:$0xff]  ;;  %849 = vmatprep.subr.mxu1 %v1776_v55 }
  0xa7   : > { %v2106_v29 = vsub.f32 %v1873_v20, %v318_v19  ;;  %v2109_v32 = vsub.f32 %v1863_v15, %v318_v19  ;;  %v287_v33 = vpop.xlane.xlu0 %286  ;;  %v383_v35 = vadd.f32 %v382_v27, %v354_v5  ;;  %v390_v37 = vsel %vm259_vm0, %v359_v11, 0.0  ;;  %706 = vmatprep.subr.mxu0 %v581_v6  ;;  %v582_v11 = vld [vmem:[%s2936_s3 + $0x58] sm:$0xff]  ;;  %v640_v6 = vld [vmem:[%s2936_s3 + $0x228] sm:$0xff] }
  0xa8   : > { %v319_v40 = vmul.f32 0.0052083335, %v287_v33  ;;  %v291_v41 = vpop.xlane.xlu1 %290  ;;  %v360_v18 = vmul.f32 %v2099_v24, %v2099_v24  ;;  %v361_v14 = vmul.f32 %v2102_v25, %v2102_v25  ;;  %v391_v20 = vadd.f32 %v390_v37, %v358_v10  ;;  %850 = vmatpush1.msra.mxu1 %v582_v11  ;;  %v639_v11 = vld [vmem:[%s2936_s3 + $0x220] sm:$0xff] }
  0xa9   : > { %388 = vadd.xlane.f32.xlu1 %v387_v21  ;;  %384 = vadd.xlane.f32.xlu0 %v383_v35  ;;  %v320_v43 = vmul.f32 0.0052083335, %v291_v41  ;;  %v362_v15 = vmul.f32 %v2106_v29, %v2106_v29  ;;  %v363_v45 = vmul.f32 %v2109_v32, %v2109_v32 }
  0xaa   : > { %v2121_v47 = vsub.f32 %v1886_v26, %v319_v40  ;;  %v2124_v48 = vsub.f32 %v1878_v22, %v319_v40  ;;  %v394_v50 = vsel %vm259_vm0, %v361_v14, 0.0  ;;  %v578_v40 = vld [vmem:[%s2936_s3 + $0x38] sm:$0xff]  ;;  %851 = vmatprep.subr.mxu1 %v1776_v55 }
  0xab   : > { %v2128_v51 = vsub.f32 %v1891_v28, %v320_v43  ;;  %v2131_v52 = vsub.f32 %v1881_v23, %v320_v43  ;;  %v295_v58 = vpop.xlane.xlu0 %294  ;;  %v395_v59 = vadd.f32 %v394_v50, %v360_v18  ;;  %v398_v60 = vsel %vm259_vm0, %v363_v45, 0.0 }
  0xac   : > { %v321_v61 = vmul.f32 0.0052083335, %v295_v58  ;;  %v299_v62 = vpop.xlane.xlu1 %298  ;;  %v364_v26 = vmul.f32 %v2121_v47, %v2121_v47  ;;  %v365_v22 = vmul.f32 %v2124_v48, %v2124_v48  ;;  %v399_v28 = vadd.f32 %v398_v60, %v362_v15 }
  0xad   : > { %392 = vadd.xlane.f32.xlu0 %v391_v20  ;;  %396 = vadd.xlane.f32.xlu1 %v395_v59  ;;  %v322_v0 = vmul.f32 0.0052083335, %v299_v62  ;;  %v366_v23 = vmul.f32 %v2128_v51, %v2128_v51  ;;  %v367_v1 = vmul.f32 %v2131_v52, %v2131_v52  ;;  %v575_v59 = vld [vmem:[%s2936_s3 + $0x20] sm:$0xff] }
  0xae   : > { %v2143_v2 = vsub.f32 %v1904_v34, %v321_v61  ;;  %v2146_v3 = vsub.f32 %v1896_v30, %v321_v61  ;;  %v402_v9 = vsel %vm259_vm0, %v365_v22, 0.0  ;;  %v576_v22 = vld [vmem:[%s2936_s3 + $0x28] sm:$0xff] }
  0xaf   : > { %v2156_v16 = vsub.f32 %v1909_v36, %v322_v0  ;;  %v2159_v17 = vsub.f32 %v1899_v31, %v322_v0  ;;  %v303_v34 = vpop.xlane.xlu0 %302  ;;  %v403_v5 = vadd.f32 %v402_v9, %v364_v26  ;;  %v406_v30 = vsel %vm259_vm0, %v367_v1, 0.0  ;;  %v580_v31 = vld [vmem:[%s2936_s3 + $0x48] sm:$0xff]  ;;  %v574_v26 = vld [vmem:[%s2936_s3 + $0x18] sm:$0xff] }
  0xb0   : > { %v323_v19 = vmul.f32 0.0052083335, %v303_v34  ;;  %v307_v21 = vpop.xlane.xlu1 %306  ;;  %v368_v10 = vmul.f32 %v2143_v2, %v2143_v2  ;;  %v369_v36 = vmul.f32 %v2146_v3, %v2146_v3  ;;  %v407_v33 = vadd.f32 %v406_v30, %v366_v23  ;;  %707 = vmatpush1.msra.mxu0 %v580_v31  ;;  %v572_v1 = vld [vmem:[%s2936_s3 + $0x8] sm:$0xff]  ;;  %v637_v31 = vld [vmem:[%s2936_s3 + $0x210] sm:$0xff] }
  0xb1   : > { %400 = vadd.xlane.f32.xlu0 %v399_v28  ;;  %404 = vadd.xlane.f32.xlu1 %v403_v5  ;;  %v324_v27 = vmul.f32 0.0052083335, %v307_v21  ;;  %v370_v35 = vmul.f32 %v2156_v16, %v2156_v16  ;;  %v371_v37 = vmul.f32 %v2159_v17, %v2159_v17  ;;  %v641_v5 = vld [vmem:[%s2936_s3 + $0x230] sm:$0xff] }
  0xb2   : > { %v2184_v41 = vsub.f32 %v1922_v42, %v323_v19  ;;  %v2187_v18 = vsub.f32 %v1914_v38, %v323_v19  ;;  %v410_v14 = vsel %vm259_vm0, %v369_v36, 0.0  ;;  %708 = vmatprep.subr.mxu0 %v578_v40  ;;  %v577_v38 = vld [vmem:[%s2936_s3 + $0x30] sm:$0xff]  ;;  %v579_v42 = vld [vmem:[%s2936_s3 + $0x40] sm:$0xff]  ;;  %v642_v19 = vld [vmem:[%s2936_s3 + $0x238] sm:$0xff] }
  0xb3   : > { %v2191_v43 = vsub.f32 %v1927_v44, %v324_v27  ;;  %v2194_v20 = vsub.f32 %v1917_v39, %v324_v27  ;;  %v311_v15 = vpop.xlane.xlu0 %310  ;;  %v411_v45 = vadd.f32 %v410_v14, %v368_v10  ;;  %v414_v50 = vsel %vm259_vm0, %v371_v37, 0.0  ;;  %709 = vmatpush1.msra.mxu0 %v577_v38  ;;  %852 = vmatpush1.msra.mxu1 %v579_v42  ;;  %v638_v36 = vld [vmem:[%s2936_s3 + $0x218] sm:$0xff]  ;;  %v635_v27 = vld [vmem:[%s2936_s3 + $0x200] sm:$0xff]  ;;  %v632_v37 = vld [vmem:[%s2936_s3 + $0x1e8] sm:$0xff] }
  0xb4   : > { %v325_v44 = vmul.f32 0.0052083335, %v311_v15  ;;  %v372_v39 = vmul.f32 %v2184_v41, %v2184_v41  ;;  %v373_v58 = vmul.f32 %v2187_v18, %v2187_v18  ;;  %v415_v60 = vadd.f32 %v414_v50, %v370_v35  ;;  %710 = vmatprep.subr.mxu0 %v575_v59  ;;  %853 = vmatprep.subr.mxu1 %v1776_v55  ;;  %v636_v35 = vld [vmem:[%s2936_s3 + $0x208] sm:$0xff]  ;;  %v631_v40 = vld [vmem:[%s2936_s3 + $0x1e0] sm:$0xff]  ;;  %v633_v14 = vld [vmem:[%s2936_s3 + $0x1f0] sm:$0xff] }
  0xb5   : > { %408 = vadd.xlane.f32.xlu0 %v407_v33  ;;  %412 = vadd.xlane.f32.xlu1 %v411_v45  ;;  %v374_v61 = vmul.f32 %v2191_v43, %v2191_v43  ;;  %v375_v62 = vmul.f32 %v2194_v20, %v2194_v20  ;;  %v634_v33 = vld [vmem:[%s2936_s3 + $0x1f8] sm:$0xff]  ;;  %v629_v15 = vld [vmem:[%s2936_s3 + $0x1d0] sm:$0xff]  ;;  %v628_v45 = vld [vmem:[%s2936_s3 + $0x1c8] sm:$0xff] }
  0xb6   : > { %v2222_v0 = vsub.f32 %v1937_v49, %v325_v44  ;;  %v2225_v28 = vsub.f32 %v1932_v46, %v325_v44  ;;  %v418_v23 = vsel %vm259_vm0, %v373_v58, 0.0  ;;  %711 = vmatpush1.msra.mxu0 %v574_v26  ;;  %854 = vmatpush1.msra.mxu1 %v576_v22  ;;  %v571_v49 = vld [vmem:[%s2936_s3] sm:$0xff]  ;;  %v573_v46 = vld [vmem:[%s2936_s3 + $0x10] sm:$0xff]  ;;  %v630_v50 = vld [vmem:[%s2936_s3 + $0x1d8] sm:$0xff] }
  0xb7   : > { %v419_v9 = vadd.f32 %v418_v23, %v372_v39  ;;  %v422_v12 = vsel %vm259_vm0, %v375_v62, 0.0  ;;  %712 = vmatprep.subr.mxu0 %v572_v1  ;;  %855 = vmatprep.subr.mxu1 %v1776_v55  ;;  %v626_v38 = vld [vmem:[%s2936_s3 + $0x1b8] sm:$0xff]  ;;  %v625_v42 = vld [vmem:[%s2936_s3 + $0x1b0] sm:$0xff]  ;;  %v627_v44 = vld [vmem:[%s2936_s3 + $0x1c0] sm:$0xff] }
  0xb8   : > { %v376_v13 = vmul.f32 %v2222_v0, %v2222_v0  ;;  %v377_v34 = vmul.f32 %v2225_v28, %v2225_v28  ;;  %v423_v30 = vadd.f32 %v422_v12, %v374_v61  ;;  %713 = vmatpush1.msra.mxu0 %v571_v49  ;;  %856 = vmatpush1.msra.mxu1 %v573_v46  ;;  %v623_v39 = vld [vmem:[%s2936_s3 + $0x1a0] sm:$0xff]  ;;  %v622_v58 = vld [vmem:[%s2936_s3 + $0x198] sm:$0xff]  ;;  %v624_v59 = vld [vmem:[%s2936_s3 + $0x1a8] sm:$0xff] }
  0xb9   : > { %416 = vadd.xlane.f32.xlu0 %v415_v60  ;;  %420 = vadd.xlane.f32.xlu1 %v419_v9  ;;  %v620_v60 = vld [vmem:[%s2936_s3 + $0x188] sm:$0xff]  ;;  %v619_v61 = vld [vmem:[%s2936_s3 + $0x180] sm:$0xff]  ;;  %v621_v62 = vld [vmem:[%s2936_s3 + $0x190] sm:$0xff] }
  0xba   : > { %v426_v21 = vsel %vm259_vm0, %v377_v34, 0.0  ;;  %730 = vmatprep.subr.mxu0 %v641_v5  ;;  %873 = vmatprep.subr.mxu1 %v1776_v55  ;;  %v1181_v26 = vld [vmem:[%s2937_s4 + $0xf8] sm:$0xff]  ;;  %v497_v34 = vlaneseq }
  0xbb   : > { %v427_v10 = vadd.f32 %v426_v21, %v376_v13  ;;  %731 = vmatpush2.msra.mxu0 %v640_v6  ;;  %874 = vmatpush2.msra.mxu1 %v642_v19  ;;  %v1245_v22 = vld [vmem:[%s2937_s4 + $0x2f8] sm:$0xff] }
  0xbc   : > { %732 = vmatprep.subr.mxu0 %v638_v36  ;;  %875 = vmatprep.subr.mxu1 %v1776_v55  ;;  %v498_v36 = vshrl.u32 %v497_v34, 7 }
  0xbd   : > { %424 = vadd.xlane.f32.xlu0 %v423_v30  ;;  %428 = vadd.xlane.f32.xlu1 %v427_v10 }
  0xbe   : > { %733 = vmatpush2.msra.mxu0 %v637_v31  ;;  %876 = vmatpush2.msra.mxu1 %v639_v11 }
  0xbf   : > { %734 = vmatprep.subr.mxu0 %v635_v27  ;;  %877 = vmatprep.subr.mxu1 %v1776_v55 }
  0xc0   : > { %735 = vmatpush2.msra.mxu0 %v634_v33  ;;  %878 = vmatpush2.msra.mxu1 %v636_v35 }
  0xc1   : > { %736 = vmatprep.subr.mxu0 %v632_v37  ;;  %879 = vmatprep.subr.mxu1 %v1776_v55  ;;  %v503_v37 = vsub.s32 1, %v498_v36 }
  0xc2   : > { %737 = vmatpush2.msra.mxu0 %v631_v40  ;;  %880 = vmatpush2.msra.mxu1 %v633_v14  ;;  %v495_v14 = vld [vmem:[%s2934_s1] sm:$0x3] }
  0xc3   : > { %738 = vmatprep.subr.mxu0 %v629_v15  ;;  %881 = vmatprep.subr.mxu1 %v1776_v55  ;;  %v499_v15 = vsub.s32 0, %v498_v36 }
  0xc4   : > { %739 = vmatpush2.msra.mxu0 %v628_v45  ;;  %882 = vmatpush2.msra.mxu1 %v630_v50 }
  0xc5   : > { %740 = vmatprep.subr.mxu0 %v626_v38  ;;  %883 = vmatprep.subr.mxu1 %v1776_v55  ;;  %v533_v38 = vld [vmem:[%s2935_s2] sm:$0x3] }
  0xc6   : > { %741 = vmatpush2.msra.mxu0 %v625_v42  ;;  %884 = vmatpush2.msra.mxu1 %v627_v44  ;;  %v2337_v42 = vrot.slane %v495_v14, %v503_v37 }
  0xc7   : > { %742 = vmatprep.subr.mxu0 %v623_v39  ;;  %885 = vmatprep.subr.mxu1 %v1776_v55 }
  0xc8   : > { %743 = vmatpush2.msra.mxu0 %v622_v58  ;;  %886 = vmatpush2.msra.mxu1 %v624_v59 }
  0xc9   : > { %744 = vmatprep.subr.mxu0 %v620_v60  ;;  %887 = vmatprep.subr.mxu1 %v1776_v55  ;;  %v2339_v60 = vrot.slane %v495_v14, %v499_v15 }
  0xca   : > { %745 = vmatpush2.msra.mxu0 %v619_v61  ;;  %888 = vmatpush2.msra.mxu1 %v621_v62  ;;  %v2342_v62 = vrot.slane %v533_v38, %v503_v37 }
  0xcb   : > { %1246 = vmatprep.subr.mxu0 %v1181_v26  ;;  %1389 = vmatprep.subr.mxu1 %v1245_v22  ;;  %v2345_v22 = vrot.slane %v533_v38, %v499_v15 }
 0x12e   : > { %v381_v23 = vpop.xlane.xlu1 %380 }
 0x12f   : > { %v430_v1 = vmul.f32 0.0052083335, %v381_v23 }
 0x131   : > { %v443_v9 = vadd.f32 1e-05, %v430_v1 }
 0x132   : > { %v389_v12 = vpop.xlane.xlu1 %388  ;;  %v385_v49 = vpop.xlane.xlu0 %384 }
 0x133   : > { %1664 = vrsqrt.f32 %v443_v9  ;;  %v432_v46 = vmul.f32 0.0052083335, %v389_v12  ;;  %v431_v13 = vmul.f32 0.0052083335, %v385_v49 }
 0x135   : > { %v445_v5 = vadd.f32 1e-05, %v432_v46  ;;  %v444_v30 = vadd.f32 1e-05, %v431_v13 }
 0x136   : > { %v397_v6 = vpop.xlane.xlu1 %396  ;;  %v393_v19 = vpop.xlane.xlu0 %392 }
 0x137   : > { %1666 = vrsqrt.f32 %v445_v5  ;;  %v434_v21 = vmul.f32 0.0052083335, %v397_v6  ;;  %v433_v10 = vmul.f32 0.0052083335, %v393_v19  ;;  %v1180_v6 = vld [vmem:[%s2937_s4 + $0xf0] sm:$0xff] }
 0x138   : > { %1668 = vrsqrt.f32 %v444_v30  ;;  %v1244_v19 = vld [vmem:[%s2937_s4 + $0x2f0] sm:$0xff] }
 0x139   : > { %v447_v31 = vadd.f32 1e-05, %v434_v21  ;;  %v446_v11 = vadd.f32 1e-05, %v433_v10 }
 0x13a   : > { %v405_v27 = vpop.xlane.xlu1 %404  ;;  %v401_v33 = vpop.xlane.xlu0 %400 }
 0x13b   : > { %1670 = vrsqrt.f32 %v447_v31  ;;  %v435_v35 = vmul.f32 0.0052083335, %v401_v33  ;;  %v436_v40 = vmul.f32 0.0052083335, %v405_v27  ;;  %v1178_v33 = vld [vmem:[%s2937_s4 + $0xe0] sm:$0xff] }
 0x13c   : > { %1672 = vrsqrt.f32 %v446_v11 }
 0x13d   : > { %v448_v45 = vadd.f32 1e-05, %v435_v35  ;;  %v449_v39 = vadd.f32 1e-05, %v436_v40 }
 0x13e   : > { %v409_v50 = vpop.xlane.xlu0 %408  ;;  %v413_v58 = vpop.xlane.xlu1 %412 }
 0x13f   : > { %1674 = vrsqrt.f32 %v448_v45  ;;  %v437_v59 = vmul.f32 0.0052083335, %v409_v50  ;;  %v438_v23 = vmul.f32 0.0052083335, %v413_v58 }
 0x140   : > { %v1665_v44 = vpop.eup %1664  ;;  %1676 = vrsqrt.f32 %v449_v39 }
 0x141   : > { %v470_v61 = vmul.f32 %v1665_v44, %v2060_v54  ;;  %v469_v26 = vmul.f32 %v1665_v44, %v2057_v53  ;;  %v450_v12 = vadd.f32 1e-05, %v437_v59  ;;  %v451_v21 = vadd.f32 1e-05, %v438_v23  ;;  %v1177_v59 = vld [vmem:[%s2937_s4 + $0xd8] sm:$0xff] }
 0x142   : > { %v417_v49 = vpop.xlane.xlu0 %416  ;;  %v421_v10 = vpop.xlane.xlu1 %420 }
 0x143   : > { %v508_v1 = vmul.f32 %v2337_v42, %v470_v61  ;;  %v507_v46 = vmul.f32 %v2339_v60, %v469_v26  ;;  %v439_v36 = vmul.f32 0.0052083335, %v417_v49  ;;  %1678 = vrsqrt.f32 %v450_v12  ;;  %v1242_v26 = vld [vmem:[%s2937_s4 + $0x2e0] sm:$0xff] }
 0x144   : > { %v1667_v9 = vpop.eup %1666  ;;  %v440_v37 = vmul.f32 0.0052083335, %v421_v10  ;;  %1680 = vrsqrt.f32 %v451_v21 }
 0x145   : > { %v1669_v13 = vpop.eup %1668  ;;  %v546_v34 = vadd.f32 %v2342_v62, %v508_v1  ;;  %v474_v54 = vmul.f32 %v1667_v9, %v2066_v57  ;;  %v545_v5 = vadd.f32 %v2345_v22, %v507_v46  ;;  %v473_v57 = vmul.f32 %v1667_v9, %v2063_v56  ;;  %v1243_v56 = vld [vmem:[%s2937_s4 + $0x2e8] sm:$0xff] }
 0x146   : > { %v472_v53 = vmul.f32 %v1669_v13, %v2080_v4  ;;  %v471_v30 = vmul.f32 %v1669_v13, %v2077_v63  ;;  %v1179_v63 = vld [vmem:[%s2937_s4 + $0xe8] sm:$0xff]  ;;  %v452_v38 = vadd.f32 1e-05, %v439_v36  ;;  %v425_v44 = vpop.xlane.xlu0 %424  ;;  %v453_v23 = vadd.f32 1e-05, %v440_v37  ;;  %v429_v49 = vpop.xlane.xlu1 %428 }
 0x147   : > { %1625 = vmatprep.mubr.msk.f32.mxu0 %vm259_vm0, %v546_v34  ;;  %1638 = vmatprep.mubr.msk.f32.mxu1 %vm259_vm0, %v546_v34  ;;  %v512_v27 = vmul.f32 %v2337_v42, %v474_v54  ;;  %v511_v45 = vmul.f32 %v2339_v60, %v473_v57  ;;  %v1175_v54 = vld [vmem:[%s2937_s4 + $0xc8] sm:$0xff] }
 0x148   : > { %v1671_v4 = vpop.eup %1670  ;;  %747 = vmatmul.mubr.f32.vlgmr.msra.gmra.mxu0 %v545_v5  ;;  %890 = vmatmul.mubr.f32.vlgmr.msra.gmra.mxu1 %v545_v5  ;;  %v510_v31 = vmul.f32 %v2337_v42, %v472_v53  ;;  %v509_v11 = vmul.f32 %v2339_v60, %v471_v30  ;;  %1682 = vrsqrt.f32 %v452_v38  ;;  %v1241_v53 = vld [vmem:[%s2937_s4 + $0x2d8] sm:$0xff] }
 0x149   : > { %v1673_v35 = vpop.eup %1672  ;;  %1247 = vmatpush1.msra.mxu0 %v1180_v6  ;;  %1390 = vmatpush1.msra.mxu1 %v1244_v19  ;;  %v550_v39 = vadd.f32 %v2342_v62, %v512_v27  ;;  %v549_v1 = vadd.f32 %v2345_v22, %v511_v45  ;;  %v477_v12 = vmul.f32 %v1671_v4, %v2099_v24  ;;  %v1174_v24 = vld [vmem:[%s2937_s4 + $0xc0] sm:$0xff]  ;;  %1684 = vrsqrt.f32 %v453_v23 }
 0x14a   : > { %v548_v40 = vadd.f32 %v2342_v62, %v510_v31  ;;  %v547_v14 = vadd.f32 %v2345_v22, %v509_v11  ;;  %v476_v15 = vmul.f32 %v1673_v35, %v2087_v8  ;;  %1248 = vmatprep.subr.mxu0 %v1179_v63  ;;  %v475_v50 = vmul.f32 %v1673_v35, %v2084_v7  ;;  %v1176_v7 = vld [vmem:[%s2937_s4 + $0xd0] sm:$0xff]  ;;  %v1173_v63 = vld [vmem:[%s2937_s4 + $0xb8] sm:$0xff] }
 0x14b   : > { %1249 = vmatpush1.msra.mxu0 %v1178_v33  ;;  %1391 = vmatprep.subr.mxu1 %v1243_v56  ;;  %v478_v8 = vmul.f32 %v1671_v4, %v2102_v25  ;;  %v441_v25 = vmul.f32 0.0052083335, %v425_v44  ;;  %v515_v6 = vmul.f32 %v2339_v60, %v477_v12  ;;  %v1240_v31 = vld [vmem:[%s2937_s4 + $0x2d0] sm:$0xff]  ;;  %v1167_v12 = vld [vmem:[%s2937_s4 + $0x88] sm:$0xff] }
 0x14c   : > { %1626 = vmatprep.mubr.msk.f32.mxu0 %vm259_vm0, %v548_v40  ;;  %1639 = vmatprep.mubr.msk.f32.mxu1 %vm259_vm0, %v548_v40  ;;  %v514_v58 = vmul.f32 %v2337_v42, %v476_v15  ;;  %v1675_v61 = vpop.eup %1674  ;;  %v513_v9 = vmul.f32 %v2339_v60, %v475_v50  ;;  %v1239_v15 = vld [vmem:[%s2937_s4 + $0x2c8] sm:$0xff] }
 0x14d   : > { %753 = vmatmul.mubr.f32.gmra.mxu0 %v547_v14  ;;  %895 = vmatmul.mubr.f32.gmra.mxu1 %v547_v14  ;;  %v516_v13 = vmul.f32 %v2337_v42, %v478_v8  ;;  %v480_v34 = vmul.f32 %v1675_v61, %v2109_v32  ;;  %v1677_v5 = vpop.eup %1676  ;;  %v442_v32 = vmul.f32 0.0052083335, %v429_v49  ;;  %v479_v19 = vmul.f32 %v1675_v61, %v2106_v29  ;;  %v1172_v29 = vld [vmem:[%s2937_s4 + $0xb0] sm:$0xff]  ;;  %v1171_v14 = vld [vmem:[%s2937_s4 + $0xa8] sm:$0xff]  ;;  %v1238_v8 = vld [vmem:[%s2937_s4 + $0x2c0] sm:$0xff] }
 0x14e   : > { %1627 = vmatprep.mubr.msk.f32.mxu0 %vm259_vm0, %v550_v39  ;;  %1640 = vmatprep.mubr.msk.f32.mxu1 %vm259_vm0, %v550_v39  ;;  %v552_v46 = vadd.f32 %v2342_v62, %v514_v58  ;;  %v551_v30 = vadd.f32 %v2345_v22, %v513_v9  ;;  %v454_v21 = vadd.f32 1e-05, %v441_v25  ;;  %v482_v57 = vmul.f32 %v1677_v5, %v2124_v48  ;;  %v1169_v58 = vld [vmem:[%s2937_s4 + $0x98] sm:$0xff]  ;;  %v1236_v49 = vld [vmem:[%s2937_s4 + $0x2b0] sm:$0xff] }
 0x14f   : > { %1250 = vmatprep.subr.mxu0 %v1177_v59  ;;  %1392 = vmatpush1.msra.mxu1 %v1242_v26  ;;  %v554_v10 = vadd.f32 %v2342_v62, %v516_v13  ;;  %v518_v36 = vmul.f32 %v2337_v42, %v480_v34  ;;  %v455_v48 = vadd.f32 1e-05, %v442_v32  ;;  %v553_v11 = vadd.f32 %v2345_v22, %v515_v6  ;;  %v1234_v32 = vld [vmem:[%s2937_s4 + $0x2a0] sm:$0xff] }
 0x150   : > { %1251 = vmatpush1.msra.mxu0 %v1176_v7  ;;  %1393 = vmatprep.subr.mxu1 %v1241_v53  ;;  %v1679_v4 = vpop.eup %1678  ;;  %v517_v27 = vmul.f32 %v2339_v60, %v479_v19  ;;  %v481_v33 = vmul.f32 %v1677_v5, %v2121_v47  ;;  %1686 = vrsqrt.f32 %v454_v21  ;;  %v520_v37 = vmul.f32 %v2337_v42, %v482_v57  ;;  %v1170_v47 = vld [vmem:[%s2937_s4 + $0xa0] sm:$0xff]  ;;  %v1165_v53 = vld [vmem:[%s2937_s4 + $0x78] sm:$0xff] }
 0x151   : > { %759 = vmatmul.mubr.f32.gmra.mxu0 %v549_v1  ;;  %900 = vmatmul.mubr.f32.gmra.mxu1 %v549_v1  ;;  %v1681_v56 = vpop.eup %1680  ;;  %v556_v35 = vadd.f32 %v2342_v62, %v518_v36  ;;  %v484_v40 = vmul.f32 %v1679_v4, %v2131_v52  ;;  %v483_v50 = vmul.f32 %v1679_v4, %v2128_v51  ;;  %1688 = vrsqrt.f32 %v455_v48  ;;  %v1168_v51 = vld [vmem:[%s2937_s4 + $0x90] sm:$0xff] }
 0x152   : > { %1628 = vmatprep.mubr.msk.f32.mxu0 %vm259_vm0, %v552_v46  ;;  %1641 = vmatprep.mubr.msk.f32.mxu1 %vm259_vm0, %v552_v46  ;;  %v555_v52 = vadd.f32 %v2345_v22, %v517_v27  ;;  %v519_v45 = vmul.f32 %v2339_v60, %v481_v33  ;;  %v558_v38 = vadd.f32 %v2342_v62, %v520_v37  ;;  %v1232_v4 = vld [vmem:[%s2937_s4 + $0x290] sm:$0xff]  ;;  %v1230_v37 = vld [vmem:[%s2937_s4 + $0x280] sm:$0xff] }
 0x153   : > { %1252 = vmatprep.subr.mxu0 %v1175_v54  ;;  %1394 = vmatpush1.msra.mxu1 %v1240_v31  ;;  %v522_v44 = vmul.f32 %v2337_v42, %v484_v40  ;;  %v486_v39 = vmul.f32 %v1681_v56, %v2146_v3  ;;  %v1237_v3 = vld [vmem:[%s2937_s4 + $0x2b8] sm:$0xff]  ;;  %v521_v26 = vmul.f32 %v2339_v60, %v483_v50  ;;  %v1228_v50 = vld [vmem:[%s2937_s4 + $0x270] sm:$0xff] }
 0x154   : > { %1253 = vmatpush1.msra.mxu0 %v1174_v24  ;;  %1395 = vmatprep.subr.mxu1 %v1239_v15  ;;  %v557_v7 = vadd.f32 %v2345_v22, %v519_v45  ;;  %v485_v23 = vmul.f32 %v1681_v56, %v2143_v2  ;;  %v1166_v2 = vld [vmem:[%s2937_s4 + $0x80] sm:$0xff]  ;;  %v1159_v45 = vld [vmem:[%s2937_s4 + $0x48] sm:$0xff] }
 0x155   : > { %765 = vmatmul.mubr.f32.gmra.mxu0 %v551_v30  ;;  %905 = vmatmul.mubr.f32.gmra.mxu1 %v551_v30  ;;  %v1683_v59 = vpop.eup %1682  ;;  %v560_v25 = vadd.f32 %v2342_v62, %v522_v44  ;;  %v524_v1 = vmul.f32 %v2337_v42, %v486_v39  ;;  %v559_v46 = vadd.f32 %v2345_v22, %v521_v26  ;;  %v1157_v39 = vld [vmem:[%s2937_s4 + $0x38] sm:$0xff]  ;;  %v1211_v26 = vld [vmem:[%s2937_s4 + $0x1e8] sm:$0xff] }
 0x156   : > { %1629 = vmatprep.mubr.msk.f32.mxu0 %vm259_vm0, %v554_v10  ;;  %1642 = vmatprep.mubr.msk.f32.mxu1 %vm259_vm0, %v554_v10  ;;  %v1685_v61 = vpop.eup %1684  ;;  %v488_v9 = vmul.f32 %v1683_v59, %v2159_v17  ;;  %v1235_v17 = vld [vmem:[%s2937_s4 + $0x2a8] sm:$0xff]  ;;  %v523_v13 = vmul.f32 %v2339_v60, %v485_v23  ;;  %v487_v34 = vmul.f32 %v1683_v59, %v2156_v16  ;;  %v1164_v16 = vld [vmem:[%s2937_s4 + $0x70] sm:$0xff]  ;;  %v1153_v59 = vld [vmem:[%s2937_s4 + $0x18] sm:$0xff] }
 0x157   : > { %1254 = vmatprep.subr.mxu0 %v1173_v63  ;;  %1396 = vmatpush1.msra.mxu1 %v1238_v8  ;;  %v562_v54 = vadd.f32 %v2342_v62, %v524_v1  ;;  %v490_v24 = vmul.f32 %v1685_v61, %v2187_v18  ;;  %v1233_v18 = vld [vmem:[%s2937_s4 + $0x298] sm:$0xff]  ;;  %v489_v21 = vmul.f32 %v1685_v61, %v2184_v41  ;;  %v1163_v63 = vld [vmem:[%s2937_s4 + $0x68] sm:$0xff]  ;;  %v1162_v41 = vld [vmem:[%s2937_s4 + $0x60] sm:$0xff] }
 0x158   : > { %1255 = vmatpush1.msra.mxu0 %v1172_v29  ;;  %1397 = vmatprep.subr.mxu1 %v1237_v3  ;;  %v526_v5 = vmul.f32 %v2337_v42, %v488_v9  ;;  %v561_v6 = vadd.f32 %v2345_v22, %v523_v13  ;;  %v525_v19 = vmul.f32 %v2339_v60, %v487_v34  ;;  %v1154_v8 = vld [vmem:[%s2937_s4 + $0x20] sm:$0xff]  ;;  %v1213_v61 = vld [vmem:[%s2937_s4 + $0x1f8] sm:$0xff]  ;;  %v1208_v1 = vld [vmem:[%s2937_s4 + $0x1d0] sm:$0xff] }
 0x159   : > { %771 = vmatmul.mubr.f32.gmra.mxu0 %v553_v11  ;;  %910 = vmatmul.mubr.f32.gmra.mxu1 %v553_v11  ;;  %v528_v36 = vmul.f32 %v2337_v42, %v490_v24  ;;  %v527_v48 = vmul.f32 %v2339_v60, %v489_v21  ;;  %v1150_v3 = vld [vmem:[%s2937_s4] sm:$0xff]  ;;  %v1207_v9 = vld [vmem:[%s2937_s4 + $0x1c8] sm:$0xff]  ;;  %v1201_v13 = vld [vmem:[%s2937_s4 + $0x198] sm:$0xff] }
 0x15a   : > { %1630 = vmatprep.mubr.msk.f32.mxu0 %vm259_vm0, %v556_v35  ;;  %1643 = vmatprep.mubr.msk.f32.mxu1 %vm259_vm0, %v556_v35  ;;  %v564_v10 = vadd.f32 %v2342_v62, %v526_v5  ;;  %v563_v31 = vadd.f32 %v2345_v22, %v525_v19  ;;  %v1161_v35 = vld [vmem:[%s2937_s4 + $0x58] sm:$0xff]  ;;  %v1210_v23 = vld [vmem:[%s2937_s4 + $0x1e0] sm:$0xff]  ;;  %v1200_v34 = vld [vmem:[%s2937_s4 + $0x190] sm:$0xff] }
 0x15b   : > { %1256 = vmatprep.subr.mxu0 %v1171_v14  ;;  %1398 = vmatpush1.msra.mxu1 %v1236_v49  ;;  %v566_v27 = vadd.f32 %v2342_v62, %v528_v36  ;;  %v565_v40 = vadd.f32 %v2345_v22, %v527_v48  ;;  %v1205_v49 = vld [vmem:[%s2937_s4 + $0x1b8] sm:$0xff]  ;;  %v1227_v5 = vld [vmem:[%s2937_s4 + $0x268] sm:$0xff]  ;;  %v1198_v24 = vld [vmem:[%s2937_s4 + $0x180] sm:$0xff] }
 0x15c   : > { %1257 = vmatpush1.msra.mxu0 %v1170_v47  ;;  %1399 = vmatprep.subr.mxu1 %v1235_v17  ;;  %v1203_v17 = vld [vmem:[%s2937_s4 + $0x1a8] sm:$0xff]  ;;  %v1194_v21 = vld [vmem:[%s2937_s4 + $0x160] sm:$0xff]  ;;  %v1193_v36 = vld [vmem:[%s2937_s4 + $0x158] sm:$0xff] }
 0x15d   : > { %777 = vmatmul.mubr.f32.gmra.mxu0 %v555_v52  ;;  %915 = vmatmul.mubr.f32.gmra.mxu1 %v555_v52  ;;  %v1687_v30 = vpop.eup %1686  ;;  %v1223_v19 = vld [vmem:[%s2937_s4 + $0x248] sm:$0xff]  ;;  %v1189_v48 = vld [vmem:[%s2937_s4 + $0x138] sm:$0xff] }
 0x15e   : > { %1631 = vmatprep.mubr.msk.f32.mxu0 %vm259_vm0, %v558_v38  ;;  %1644 = vmatprep.mubr.msk.f32.mxu1 %vm259_vm0, %v558_v38  ;;  %v492_v57 = vmul.f32 %v1687_v30, %v2194_v20  ;;  %v1689_v29 = vpop.eup %1688  ;;  %v1231_v20 = vld [vmem:[%s2937_s4 + $0x288] sm:$0xff]  ;;  %v491_v11 = vmul.f32 %v1687_v30, %v2191_v43  ;;  %v1160_v43 = vld [vmem:[%s2937_s4 + $0x50] sm:$0xff]  ;;  %v1225_v30 = vld [vmem:[%s2937_s4 + $0x258] sm:$0xff] }
 0x15f   : > { %1258 = vmatprep.subr.mxu0 %v1169_v58  ;;  %1400 = vmatpush1.msra.mxu1 %v1234_v32  ;;  %v494_v56 = vmul.f32 %v1689_v29, %v2225_v28  ;;  %v1229_v28 = vld [vmem:[%s2937_s4 + $0x278] sm:$0xff]  ;;  %v493_v47 = vmul.f32 %v1689_v29, %v2222_v0  ;;  %v1158_v0 = vld [vmem:[%s2937_s4 + $0x40] sm:$0xff]  ;;  %v1156_v58 = vld [vmem:[%s2937_s4 + $0x30] sm:$0xff] }
 0x160   : > { %1259 = vmatpush1.msra.mxu0 %v1168_v51  ;;  %1401 = vmatprep.subr.mxu1 %v1233_v18  ;;  %v530_v33 = vmul.f32 %v2337_v42, %v492_v57  ;;  %v529_v14 = vmul.f32 %v2339_v60, %v491_v11  ;;  %v1151_v51 = vld [vmem:[%s2937_s4 + $0x8] sm:$0xff]  ;;  %v1197_v32 = vld [vmem:[%s2937_s4 + $0x178] sm:$0xff]  ;;  %v1224_v18 = vld [vmem:[%s2937_s4 + $0x250] sm:$0xff] }
 0x161   : > { %783 = vmatmul.mubr.f32.gmra.mxu0 %v557_v7  ;;  %920 = vmatmul.mubr.f32.gmra.mxu1 %v557_v7  ;;  %v532_v52 = vmul.f32 %v2337_v42, %v494_v56  ;;  %v531_v38 = vmul.f32 %v2339_v60, %v493_v47  ;;  %v1212_v7 = vld [vmem:[%s2937_s4 + $0x1f0] sm:$0xff]  ;;  %v1221_v57 = vld [vmem:[%s2937_s4 + $0x238] sm:$0xff]  ;;  %v1191_v29 = vld [vmem:[%s2937_s4 + $0x148] sm:$0xff] }
 0x162   : > { %1632 = vmatprep.mubr.msk.f32.mxu0 %vm259_vm0, %v560_v25  ;;  %1645 = vmatprep.mubr.msk.f32.mxu1 %vm259_vm0, %v560_v25  ;;  %v568_v15 = vadd.f32 %v2342_v62, %v530_v33  ;;  %v567_v42 = vadd.f32 %v2345_v22, %v529_v14  ;;  %v1209_v25 = vld [vmem:[%s2937_s4 + $0x1d8] sm:$0xff]  ;;  %v1188_v11 = vld [vmem:[%s2937_s4 + $0x130] sm:$0xff]  ;;  %v1187_v33 = vld [vmem:[%s2937_s4 + $0x128] sm:$0xff] }
 0x163   : > { %1260 = vmatprep.subr.mxu0 %v1167_v12  ;;  %1402 = vmatpush1.msra.mxu1 %v1232_v4  ;;  %v570_v44 = vadd.f32 %v2342_v62, %v532_v52  ;;  %v569_v60 = vadd.f32 %v2345_v22, %v531_v38  ;;  %v1155_v62 = vld [vmem:[%s2937_s4 + $0x28] sm:$0xff]  ;;  %v1152_v22 = vld [vmem:[%s2937_s4 + $0x10] sm:$0xff]  ;;  %v1206_v12 = vld [vmem:[%s2937_s4 + $0x1c0] sm:$0xff] }
 0x164   : > { %1261 = vmatpush1.msra.mxu0 %v1166_v2  ;;  %1403 = vmatprep.subr.mxu1 %v1231_v20  ;;  %v1204_v2 = vld [vmem:[%s2937_s4 + $0x1b0] sm:$0xff]  ;;  %v1190_v20 = vld [vmem:[%s2937_s4 + $0x140] sm:$0xff]  ;;  %v1183_v14 = vld [vmem:[%s2937_s4 + $0x108] sm:$0xff] }
 0x165   : > { %789 = vmatmul.mubr.f32.gmra.mxu0 %v559_v46  ;;  %925 = vmatmul.mubr.f32.gmra.mxu1 %v559_v46  ;;  %v1202_v46 = vld [vmem:[%s2937_s4 + $0x1a0] sm:$0xff]  ;;  %v1220_v4 = vld [vmem:[%s2937_s4 + $0x230] sm:$0xff] }
 0x166   : > { %1633 = vmatprep.mubr.msk.f32.mxu0 %vm259_vm0, %v562_v54  ;;  %1646 = vmatprep.mubr.msk.f32.mxu1 %vm259_vm0, %v562_v54  ;;  %v1199_v54 = vld [vmem:[%s2937_s4 + $0x188] sm:$0xff]  ;;  %v1216_v56 = vld [vmem:[%s2937_s4 + $0x210] sm:$0xff]  ;;  %v1182_v47 = vld [vmem:[%s2937_s4 + $0x100] sm:$0xff] }
 0x167   : > { %1262 = vmatprep.subr.mxu0 %v1165_v53  ;;  %1404 = vmatpush1.msra.mxu1 %v1230_v37  ;;  %v1226_v53 = vld [vmem:[%s2937_s4 + $0x260] sm:$0xff]  ;;  %v1215_v37 = vld [vmem:[%s2937_s4 + $0x208] sm:$0xff] }
 0x168   : > { %1263 = vmatpush1.msra.mxu0 %v1164_v16  ;;  %1405 = vmatprep.subr.mxu1 %v1229_v28  ;;  %v1196_v16 = vld [vmem:[%s2937_s4 + $0x170] sm:$0xff]  ;;  %v1214_v28 = vld [vmem:[%s2937_s4 + $0x200] sm:$0xff] }
 0x169   : > { %795 = vmatmul.mubr.f32.gmra.mxu0 %v561_v6  ;;  %930 = vmatmul.mubr.f32.gmra.mxu1 %v561_v6  ;;  %v1195_v6 = vld [vmem:[%s2937_s4 + $0x168] sm:$0xff] }
 0x16a   : > { %1634 = vmatprep.mubr.msk.f32.mxu0 %vm259_vm0, %v564_v10  ;;  %1647 = vmatprep.mubr.msk.f32.mxu1 %vm259_vm0, %v564_v10  ;;  %v1222_v10 = vld [vmem:[%s2937_s4 + $0x240] sm:$0xff] }
 0x16b   : > { %1264 = vmatprep.subr.mxu0 %v1163_v63  ;;  %1406 = vmatpush1.msra.mxu1 %v1228_v50  ;;  %v1192_v63 = vld [vmem:[%s2937_s4 + $0x150] sm:$0xff] }
 0x16c   : > { %1265 = vmatpush1.msra.mxu0 %v1162_v41  ;;  %1407 = vmatprep.subr.mxu1 %v1227_v5  ;;  %v1219_v41 = vld [vmem:[%s2937_s4 + $0x228] sm:$0xff] }
 0x16d   : > { %801 = vmatmul.mubr.f32.gmra.mxu0 %v563_v31  ;;  %935 = vmatmul.mubr.f32.gmra.mxu1 %v563_v31  ;;  %v1218_v31 = vld [vmem:[%s2937_s4 + $0x220] sm:$0xff] }
 0x16e   : > { %1635 = vmatprep.mubr.msk.f32.mxu0 %vm259_vm0, %v566_v27  ;;  %1648 = vmatprep.mubr.msk.f32.mxu1 %vm259_vm0, %v566_v27  ;;  %v1217_v27 = vld [vmem:[%s2937_s4 + $0x218] sm:$0xff] }
 0x16f   : > { %1266 = vmatprep.subr.mxu0 %v1161_v35  ;;  %1408 = vmatpush1.msra.mxu1 %v1226_v53  ;;  %v1186_v35 = vld [vmem:[%s2937_s4 + $0x120] sm:$0xff] }
 0x170   : > { %1267 = vmatpush1.msra.mxu0 %v1160_v43  ;;  %1409 = vmatprep.subr.mxu1 %v1225_v30  ;;  %v1185_v43 = vld [vmem:[%s2937_s4 + $0x118] sm:$0xff] }
 0x171   : > { %807 = vmatmul.mubr.f32.gmra.mxu0 %v565_v40  ;;  %940 = vmatmul.mubr.f32.gmra.mxu1 %v565_v40  ;;  %v1184_v40 = vld [vmem:[%s2937_s4 + $0x110] sm:$0xff] }
 0x172   : > { %1636 = vmatprep.mubr.msk.f32.mxu0 %vm259_vm0, %v568_v15  ;;  %1649 = vmatprep.mubr.msk.f32.mxu1 %vm259_vm0, %v568_v15 }
 0x173   : > { %1268 = vmatprep.subr.mxu0 %v1159_v45  ;;  %1410 = vmatpush1.msra.mxu1 %v1224_v18 }
 0x174   : > { %1269 = vmatpush1.msra.mxu0 %v1158_v0  ;;  %1411 = vmatprep.subr.mxu1 %v1223_v19 }
 0x175   : > { %813 = vmatmul.mubr.f32.gmra.mxu0 %v567_v42  ;;  %945 = vmatmul.mubr.f32.gmra.mxu1 %v567_v42 }
 0x176   : > { %1637 = vmatprep.mubr.msk.f32.mxu0 %vm259_vm0, %v570_v44  ;;  %1650 = vmatprep.mubr.msk.f32.mxu1 %vm259_vm0, %v570_v44 }
 0x177   : > { %1270 = vmatprep.subr.mxu0 %v1157_v39  ;;  %1412 = vmatpush1.msra.mxu1 %v1222_v10 }
 0x178   : > { %1271 = vmatpush1.msra.mxu0 %v1156_v58  ;;  %1413 = vmatprep.subr.mxu1 %v1221_v57 }
 0x179   : > { %819 = vmatmul.mubr.f32.gmra.mxu0 %v569_v60  ;;  %950 = vmatmul.mubr.f32.gmra.mxu1 %v569_v60 }
 0x17a   : > { %1272 = vmatprep.subr.mxu0 %v1155_v62  ;;  %1453 = vmatprep.mubr.f32.mxu1 %v1776_v55 }
 0x17b   : > { %1273 = vmatpush1.msra.mxu0 %v1154_v8  ;;  %1414 = vmatpush1.msra.mxu1 %v1220_v4 }
 0x17c   : > { %1274 = vmatprep.subr.mxu0 %v1153_v59  ;;  %1415 = vmatprep.subr.mxu1 %v1219_v41 }
 0x17d   : > { %1275 = vmatpush1.msra.mxu0 %v1152_v22  ;;  %1416 = vmatpush1.msra.mxu1 %v1218_v31 }
 0x17e   : > { %1276 = vmatprep.subr.mxu0 %v1151_v51  ;;  %1417 = vmatprep.subr.mxu1 %v1217_v27 }
 0x17f   : > { %1277 = vmatpush1.msra.mxu0 %v1150_v3  ;;  %1418 = vmatpush1.msra.mxu1 %v1216_v56 }
 0x180   : > { %1278 = vmatprep.subr.mxu0 %v1213_v61  ;;  %1419 = vmatprep.subr.mxu1 %v1215_v37 }
 0x181   : > { %1279 = vmatpush2.msra.mxu0 %v1212_v7  ;;  %1420 = vmatpush1.msra.mxu1 %v1214_v28 }
 0x182   : > { %1280 = vmatprep.subr.mxu0 %v1211_v26 }
 0x183   : > { %1281 = vmatpush2.msra.mxu0 %v1210_v23 }
 0x184   : > { %1282 = vmatprep.subr.mxu0 %v1209_v25 }
 0x185   : > { %1283 = vmatpush2.msra.mxu0 %v1208_v1 }
 0x186   : > { %1284 = vmatprep.subr.mxu0 %v1207_v9 }
 0x187   : > { %1285 = vmatpush2.msra.mxu0 %v1206_v12 }
 0x188   : > { %1286 = vmatprep.subr.mxu0 %v1205_v49 }
 0x189   : > { %1287 = vmatpush2.msra.mxu0 %v1204_v2 }
 0x18a   : > { %1288 = vmatprep.subr.mxu0 %v1203_v17 }
 0x18b   : > { %1289 = vmatpush2.msra.mxu0 %v1202_v46 }
 0x18c   : > { %1290 = vmatprep.subr.mxu0 %v1201_v13 }
 0x18d   : > { %1291 = vmatpush2.msra.mxu0 %v1200_v34 }
 0x18e   : > { %1292 = vmatprep.subr.mxu0 %v1199_v54 }
 0x18f   : > { %1293 = vmatpush2.msra.mxu0 %v1198_v24 }
 0x190   : > { %1294 = vmatprep.subr.mxu0 %v1197_v32 }
 0x191   : > { %1295 = vmatpush2.msra.mxu0 %v1196_v16 }
 0x192   : > { %1296 = vmatprep.subr.mxu0 %v1195_v6 }
 0x193   : > { %1297 = vmatpush2.msra.mxu0 %v1194_v21 }
 0x194   : > { %1298 = vmatprep.subr.mxu0 %v1193_v36 }
 0x195   : > { %1299 = vmatpush2.msra.mxu0 %v1192_v63 }
 0x196   : > { %1300 = vmatprep.subr.mxu0 %v1191_v29 }
 0x197   : > { %1301 = vmatpush2.msra.mxu0 %v1190_v20 }
 0x198   : > { %1302 = vmatprep.subr.mxu0 %v1189_v48 }
 0x199   : > { %1303 = vmatpush2.msra.mxu0 %v1188_v11 }
 0x19a   : > { %1304 = vmatprep.subr.mxu0 %v1187_v33 }
 0x19b   : > { %1305 = vmatpush2.msra.mxu0 %v1186_v35 }
 0x19c   : > { %1306 = vmatprep.subr.mxu0 %v1185_v43 }
 0x19d   : > { %1307 = vmatpush2.msra.mxu0 %v1184_v40 }
 0x19e   : > { %1308 = vmatprep.subr.mxu0 %v1183_v14 }
 0x19f   : > { %1309 = vmatpush2.msra.mxu0 %v1182_v47 }
 0x208   : > { %v748_v15 = vpop.f32.mrf.mxu0  ;;  %v891_v52 = vpop.f32.mrf.mxu1 }
 0x209   : > { %v994_v45 = vmul.f32 0.70710677, %v748_v15  ;;  %v996_v50 = vmul.f32 0.70710677, %v891_v52  ;;  %v957_v34 = vmul.f32 0.5, %v891_v52  ;;  %v955_v10 = vmul.f32 0.5, %v748_v15 }
 0x20a   : > { %v750_v0 = vpop.f32.mrf.mxu0  ;;  %v893_v42 = vpop.f32.mrf.mxu1 }
 0x20b   : > { %1690 = verf.f32 %v994_v45  ;;  %v995_v38 = vmul.f32 0.70710677, %v750_v0  ;;  %v956_v16 = vmul.f32 0.5, %v750_v0 }
 0x20c   : > { %1692 = verf.f32 %v996_v50 }
 0x20d   : > { %1694 = verf.f32 %v995_v38  ;;  %v2732_v44 = vpop.f32.mrf.mxu0  ;;  %v896_v39 = vpop.f32.mrf.mxu1 }
 0x20e   : > { %v997_v58 = vmul.f32 0.70710677, %v2732_v44  ;;  %v999_v60 = vmul.f32 0.70710677, %v896_v39  ;;  %v960_v33 = vmul.f32 0.5, %v896_v39  ;;  %v958_v28 = vmul.f32 0.5, %v2732_v44 }
 0x20f   : > { %v2735_v62 = vpop.f32.mrf.mxu0  ;;  %v898_v8 = vpop.f32.mrf.mxu1 }
 0x210   : > { %1696 = verf.f32 %v997_v58  ;;  %v998_v59 = vmul.f32 0.70710677, %v2735_v62  ;;  %v959_v40 = vmul.f32 0.5, %v2735_v62 }
 0x211   : > { %1698 = verf.f32 %v999_v60  ;;  %v2738_v22 = vpop.f32.mrf.mxu0  ;;  %v2740_v51 = vpop.f32.mrf.mxu1 }
 0x212   : > { %1700 = verf.f32 %v998_v59  ;;  %v1000_v3 = vmul.f32 0.70710677, %v2738_v22  ;;  %v1002_v61 = vmul.f32 0.70710677, %v2740_v51  ;;  %v963_v39 = vmul.f32 0.5, %v2740_v51 }
 0x213   : > { %v2744_v7 = vpop.f32.mrf.mxu0  ;;  %v903_v26 = vpop.f32.mrf.mxu1 }
 0x214   : > { %1702 = verf.f32 %v1000_v3  ;;  %v1001_v23 = vmul.f32 0.70710677, %v2744_v7 }
 0x215   : > { %1704 = verf.f32 %v1002_v61  ;;  %v2747_v25 = vpop.f32.mrf.mxu0  ;;  %v2749_v1 = vpop.f32.mrf.mxu1  ;;  %v962_v61 = vmul.f32 0.5, %v2744_v7 }
 0x216   : > { %1706 = verf.f32 %v1001_v23  ;;  %v1003_v9 = vmul.f32 0.70710677, %v2747_v25  ;;  %v1005_v12 = vmul.f32 0.70710677, %v2749_v1  ;;  %v961_v23 = vmul.f32 0.5, %v2738_v22 }
 0x217   : > { %v2753_v49 = vpop.f32.mrf.mxu0  ;;  %v908_v2 = vpop.f32.mrf.mxu1 }
 0x218   : > { %v1691_v17 = vpop.eup %1690  ;;  %1708 = verf.f32 %v1003_v9  ;;  %v1004_v46 = vmul.f32 0.70710677, %v2753_v49 }
 0x219   : > { %v1693_v13 = vpop.eup %1692  ;;  %1710 = verf.f32 %v1005_v12  ;;  %v2756_v54 = vpop.f32.mrf.mxu0  ;;  %v1072_v53 = vadd.f32 1.0, %v1691_v17 }
 0x21a   : > { %v2758_v5 = vpop.f32.mrf.mxu1  ;;  %v1695_v24 = vpop.eup %1694  ;;  %v1074_v32 = vadd.f32 1.0, %v1693_v13  ;;  %1712 = verf.f32 %v1004_v46  ;;  %v1006_v30 = vmul.f32 0.70710677, %v2756_v54 }
 0x21b   : > { %v1073_v18 = vadd.f32 1.0, %v1695_v24  ;;  %v1008_v6 = vmul.f32 0.70710677, %v2758_v5  ;;  %v2762_v19 = vpop.f32.mrf.mxu0  ;;  %v1111_v31 = vmul.f32 %v1072_v53, %v955_v10 }
 0x21c   : > { %v913_v21 = vpop.f32.mrf.mxu1  ;;  %v1113_v36 = vmul.f32 %v1074_v32, %v957_v34  ;;  %1714 = verf.f32 %v1006_v30  ;;  %v1007_v57 = vmul.f32 0.70710677, %v2762_v19  ;;  %v966_v34 = vmul.f32 0.5, %v2749_v1 }
 0x21d   : > { %v1697_v63 = vpop.eup %1696  ;;  %v1112_v4 = vmul.f32 %v1073_v18, %v956_v16  ;;  %1716 = verf.f32 %v1008_v6  ;;  %v2765_v29 = vpop.f32.mrf.mxu0  ;;  %v964_v6 = vmul.f32 0.5, %v2747_v25  ;;  %v965_v21 = vmul.f32 0.5, %v2753_v49 }
 0x21e   : > { %v2767_v41 = vpop.f32.mrf.mxu1  ;;  %v1699_v20 = vpop.eup %1698  ;;  %v1075_v48 = vadd.f32 1.0, %v1697_v63  ;;  %1718 = verf.f32 %v1007_v57  ;;  %v1009_v11 = vmul.f32 0.70710677, %v2765_v29  ;;  %1454 = vmatmul.mubr.f32.vlgmr.msra.gmra.mxu1 %v1113_v36  ;;  %v969_v49 = vmul.f32 0.5, %v2758_v5 }
 0x21f   : > { %v1701_v27 = vpop.eup %1700  ;;  %v1077_v56 = vadd.f32 1.0, %v1699_v20  ;;  %v1011_v35 = vmul.f32 0.70710677, %v2767_v41  ;;  %v2771_v37 = vpop.f32.mrf.mxu0  ;;  %1310 = vmatprep.mubr.f32.mxu0 %v1112_v4  ;;  %1459 = vmatprep.mubr.f32.mxu1 %v1776_v55 }
 0x220   : > { %v918_v43 = vpop.f32.mrf.mxu1  ;;  %v1076_v14 = vadd.f32 1.0, %v1701_v27  ;;  %1720 = verf.f32 %v1009_v11  ;;  %1311 = vmatmul.mubr.f32.vlgmr.msra.gmra.mxu0 %v1111_v31  ;;  %v1010_v52 = vmul.f32 0.70710677, %v2771_v37  ;;  %v1114_v42 = vmul.f32 %v1075_v48, %v958_v28 }
 0x221   : > { %v1703_v47 = vpop.eup %1702  ;;  %v1116_v15 = vmul.f32 %v1077_v56, %v960_v33  ;;  %1722 = verf.f32 %v1011_v35  ;;  %v2777_v45 = vpop.f32.mrf.mxu0  ;;  %v968_v28 = vmul.f32 0.5, %v2762_v19  ;;  %v972_v19 = vmul.f32 0.5, %v2767_v41 }
 0x222   : > { %v2779_v50 = vpop.f32.mrf.mxu1  ;;  %v1705_v0 = vpop.eup %1704  ;;  %v1115_v38 = vmul.f32 %v1076_v14, %v959_v40  ;;  %v1012_v44 = vmul.f32 0.70710677, %v2777_v45  ;;  %v1078_v60 = vadd.f32 1.0, %v1703_v47  ;;  %1724 = verf.f32 %v1010_v52 }
 0x223   : > { %v1707_v58 = vpop.eup %1706  ;;  %v1080_v62 = vadd.f32 1.0, %v1705_v0  ;;  %v1014_v8 = vmul.f32 0.70710677, %v2779_v50  ;;  %1460 = vmatmul.mubr.f32.gmra.mxu1 %v1116_v15  ;;  %v2784_v59 = vpop.f32.mrf.mxu0  ;;  %v967_v14 = vmul.f32 0.5, %v2756_v54 }
 0x224   : > { %v923_v3 = vpop.f32.mrf.mxu1  ;;  %v1079_v26 = vadd.f32 1.0, %v1707_v58  ;;  %1726 = verf.f32 %v1012_v44  ;;  %1316 = vmatprep.mubr.f32.mxu0 %v1115_v38  ;;  %1465 = vmatprep.mubr.f32.mxu1 %v1776_v55  ;;  %v1013_v12 = vmul.f32 0.70710677, %v2784_v59  ;;  %v1117_v32 = vmul.f32 %v1078_v60, %v961_v23 }
 0x225   : > { %v1709_v51 = vpop.eup %1708  ;;  %v1119_v9 = vmul.f32 %v1080_v62, %v963_v39  ;;  %1728 = verf.f32 %v1014_v8  ;;  %v2790_v2 = vpop.f32.mrf.mxu0  ;;  %1317 = vmatmul.mubr.f32.gmra.mxu0 %v1114_v42 }
 0x226   : > { %v2792_v17 = vpop.f32.mrf.mxu1  ;;  %v1711_v46 = vpop.eup %1710  ;;  %v1118_v13 = vmul.f32 %v1079_v26, %v962_v61  ;;  %v1081_v7 = vadd.f32 1.0, %v1709_v51  ;;  %v1015_v24 = vmul.f32 0.70710677, %v2790_v2  ;;  %1730 = verf.f32 %v1013_v12 }
 0x227   : > { %v1713_v53 = vpop.eup %1712  ;;  %v1083_v30 = vadd.f32 1.0, %v1711_v46  ;;  %v1017_v22 = vmul.f32 0.70710677, %v2792_v17  ;;  %1466 = vmatmul.mubr.f32.gmra.mxu1 %v1119_v9  ;;  %v2797_v16 = vpop.f32.mrf.mxu0  ;;  %v971_v51 = vmul.f32 0.5, %v2771_v37 }
 0x228   : > { %v928_v18 = vpop.f32.mrf.mxu1  ;;  %v1082_v10 = vadd.f32 1.0, %v1713_v53  ;;  %1732 = verf.f32 %v1015_v24  ;;  %1322 = vmatprep.mubr.f32.mxu0 %v1118_v13  ;;  %1471 = vmatprep.mubr.f32.mxu1 %v1776_v55  ;;  %v1016_v57 = vmul.f32 0.70710677, %v2797_v16  ;;  %v1120_v31 = vmul.f32 %v1081_v7, %v964_v6 }
 0x229   : > { %v1715_v1 = vpop.eup %1714  ;;  %v1122_v36 = vmul.f32 %v1083_v30, %v966_v34  ;;  %1734 = verf.f32 %v1017_v22  ;;  %v2803_v63 = vpop.f32.mrf.mxu0  ;;  %1323 = vmatmul.mubr.f32.gmra.mxu0 %v1117_v32  ;;  %v970_v13 = vmul.f32 0.5, %v2765_v29  ;;  %v975_v24 = vmul.f32 0.5, %v2779_v50 }
 0x22a   : > { %v2805_v4 = vpop.f32.mrf.mxu1  ;;  %v1717_v20 = vpop.eup %1716  ;;  %v1121_v25 = vmul.f32 %v1082_v10, %v965_v21  ;;  %v1018_v48 = vmul.f32 0.70710677, %v2803_v63  ;;  %v1084_v27 = vadd.f32 1.0, %v1715_v1  ;;  %1736 = verf.f32 %v1016_v57 }
 0x22b   : > { %v1719_v11 = vpop.eup %1718  ;;  %v1086_v33 = vadd.f32 1.0, %v1717_v20  ;;  %v1020_v56 = vmul.f32 0.70710677, %v2805_v4  ;;  %1472 = vmatmul.mubr.f32.gmra.mxu1 %v1122_v36  ;;  %v2810_v35 = vpop.f32.mrf.mxu0  ;;  %v974_v1 = vmul.f32 0.5, %v2784_v59 }
 0x22c   : > { %v933_v43 = vpop.f32.mrf.mxu1  ;;  %v1085_v40 = vadd.f32 1.0, %v1719_v11  ;;  %1738 = verf.f32 %v1018_v48  ;;  %1328 = vmatprep.mubr.f32.mxu0 %v1121_v25  ;;  %1477 = vmatprep.mubr.f32.mxu1 %v1776_v55  ;;  %v1019_v15 = vmul.f32 0.70710677, %v2810_v35  ;;  %v1123_v44 = vmul.f32 %v1084_v27, %v967_v14 }
 0x22d   : > { %v1721_v5 = vpop.eup %1720  ;;  %v1125_v47 = vmul.f32 %v1086_v33, %v969_v49  ;;  %1740 = verf.f32 %v1020_v56  ;;  %v2816_v52 = vpop.f32.mrf.mxu0  ;;  %1329 = vmatmul.mubr.f32.gmra.mxu0 %v1120_v31  ;;  %v973_v31 = vmul.f32 0.5, %v2777_v45  ;;  %v978_v48 = vmul.f32 0.5, %v2792_v17 }
 0x22e   : > { %v2818_v0 = vpop.f32.mrf.mxu1  ;;  %v1723_v42 = vpop.eup %1722  ;;  %v1124_v38 = vmul.f32 %v1085_v40, %v968_v28  ;;  %v1021_v39 = vmul.f32 0.70710677, %v2816_v52  ;;  %1742 = verf.f32 %v1019_v15  ;;  %v1087_v3 = vadd.f32 1.0, %v1721_v5 }
 0x22f   : > { %v1089_v58 = vadd.f32 1.0, %v1723_v42  ;;  %v1023_v54 = vmul.f32 0.70710677, %v2818_v0  ;;  %1478 = vmatmul.mubr.f32.gmra.mxu1 %v1125_v47  ;;  %v2823_v60 = vpop.f32.mrf.mxu0  ;;  %v1725_v8 = vpop.eup %1724  ;;  %v977_v14 = vmul.f32 0.5, %v2797_v16 }
 0x230   : > { %v938_v62 = vpop.f32.mrf.mxu1  ;;  %1744 = verf.f32 %v1021_v39  ;;  %v1022_v61 = vmul.f32 0.70710677, %v2823_v60  ;;  %1334 = vmatprep.mubr.f32.mxu0 %v1124_v38  ;;  %1483 = vmatprep.mubr.f32.mxu1 %v1776_v55  ;;  %v1088_v23 = vadd.f32 1.0, %v1725_v8  ;;  %v1126_v18 = vmul.f32 %v1087_v3, %v970_v13 }
 0x231   : > { %v1727_v41 = vpop.eup %1726  ;;  %v1128_v26 = vmul.f32 %v1089_v58, %v972_v19  ;;  %1746 = verf.f32 %v1023_v54  ;;  %v2828_v9 = vpop.f32.mrf.mxu0  ;;  %1335 = vmatmul.mubr.f32.gmra.mxu0 %v1123_v44  ;;  %v976_v38 = vmul.f32 0.5, %v2790_v2  ;;  %v981_v44 = vmul.f32 0.5, %v2805_v4 }
 0x232   : > { %v2830_v12 = vpop.f32.mrf.mxu1  ;;  %v1729_v46 = vpop.eup %1728  ;;  %1748 = verf.f32 %v1022_v61  ;;  %v1024_v7 = vmul.f32 0.70710677, %v2828_v9  ;;  %v1127_v34 = vmul.f32 %v1088_v23, %v971_v51  ;;  %v1090_v6 = vadd.f32 1.0, %v1727_v41 }
 0x233   : > { %v1092_v53 = vadd.f32 1.0, %v1729_v46  ;;  %v1026_v32 = vmul.f32 0.70710677, %v2830_v12  ;;  %1484 = vmatmul.mubr.f32.gmra.mxu1 %v1128_v26  ;;  %v2836_v37 = vpop.f32.mrf.mxu0  ;;  %v1731_v22 = vpop.eup %1730  ;;  %v980_v51 = vmul.f32 0.5, %v2810_v35  ;;  %v979_v46 = vmul.f32 0.5, %v2803_v63 }
 0x234   : > { %v943_v30 = vpop.f32.mrf.mxu1  ;;  %1750 = verf.f32 %v1024_v7  ;;  %v1025_v21 = vmul.f32 0.70710677, %v2836_v37  ;;  %1489 = vmatprep.mubr.f32.mxu1 %v1776_v55  ;;  %v1091_v50 = vadd.f32 1.0, %v1731_v22  ;;  %1340 = vmatprep.mubr.f32.mxu0 %v1127_v34  ;;  %v1129_v43 = vmul.f32 %v1090_v6, %v973_v31 }
 0x235   : > { %v1733_v29 = vpop.eup %1732  ;;  %v1131_v10 = vmul.f32 %v1092_v53, %v975_v24  ;;  %1752 = verf.f32 %v1026_v32  ;;  %v2841_v36 = vpop.f32.mrf.mxu0  ;;  %1341 = vmatmul.mubr.f32.gmra.mxu0 %v1126_v18  ;;  %v984_v34 = vmul.f32 0.5, %v2818_v0  ;;  %v983_v30 = vmul.f32 0.5, %v2823_v60 }
 0x236   : > { %v2843_v57 = vpop.f32.mrf.mxu1  ;;  %v1735_v20 = vpop.eup %1734  ;;  %1754 = verf.f32 %v1025_v21  ;;  %v1027_v25 = vmul.f32 0.70710677, %v2841_v36  ;;  %v1130_v49 = vmul.f32 %v1091_v50, %v974_v1  ;;  %v1093_v28 = vadd.f32 1.0, %v1733_v29 }
 0x237   : > { %v1095_v11 = vadd.f32 1.0, %v1735_v20  ;;  %v1029_v59 = vmul.f32 0.70710677, %v2843_v57  ;;  %1490 = vmatmul.mubr.f32.gmra.mxu1 %v1131_v10  ;;  %v2849_v27 = vpop.f32.mrf.mxu0  ;;  %v1737_v56 = vpop.eup %1736  ;;  %v982_v63 = vmul.f32 0.5, %v2816_v52  ;;  %v987_v0 = vmul.f32 0.5, %v2830_v12 }
 0x238   : > { %v948_v33 = vpop.f32.mrf.mxu1  ;;  %1756 = verf.f32 %v1027_v25  ;;  %v1028_v45 = vmul.f32 0.70710677, %v2849_v27  ;;  %1495 = vmatprep.mubr.f32.mxu1 %v1776_v55  ;;  %v1094_v17 = vadd.f32 1.0, %v1737_v56  ;;  %1346 = vmatprep.mubr.f32.mxu0 %v1130_v49  ;;  %v1132_v3 = vmul.f32 %v1093_v28, %v976_v38 }
 0x239   : > { %v1739_v40 = vpop.eup %1738  ;;  %v1134_v5 = vmul.f32 %v1095_v11, %v978_v48  ;;  %1758 = verf.f32 %v1029_v59  ;;  %v2854_v47 = vpop.f32.mrf.mxu0  ;;  %1347 = vmatmul.mubr.f32.gmra.mxu0 %v1129_v43  ;;  %v986_v60 = vmul.f32 0.5, %v2836_v37  ;;  %v985_v52 = vmul.f32 0.5, %v2828_v9 }
 0x23a   : > { %v2856_v15 = vpop.f32.mrf.mxu1  ;;  %v1741_v42 = vpop.eup %1740  ;;  %1760 = verf.f32 %v1028_v45  ;;  %v1030_v19 = vmul.f32 0.70710677, %v2854_v47  ;;  %v1133_v39 = vmul.f32 %v1094_v17, %v977_v14  ;;  %v1096_v61 = vadd.f32 1.0, %v1739_v40 }
 0x23b   : > { %v1098_v58 = vadd.f32 1.0, %v1741_v42  ;;  %v1032_v16 = vmul.f32 0.70710677, %v2856_v15  ;;  %1496 = vmatmul.mubr.f32.gmra.mxu1 %v1134_v5  ;;  %v2862_v54 = vpop.f32.mrf.mxu0  ;;  %v1743_v8 = vpop.eup %1742  ;;  %v990_v12 = vmul.f32 0.5, %v2843_v57  ;;  %v989_v37 = vmul.f32 0.5, %v2849_v27 }
 0x23c   : > { %v953_v62 = vpop.f32.mrf.mxu1  ;;  %1762 = verf.f32 %v1030_v19  ;;  %v1031_v2 = vmul.f32 0.70710677, %v2862_v54  ;;  %1501 = vmatprep.mubr.f32.mxu1 %v1776_v55  ;;  %v1097_v4 = vadd.f32 1.0, %v1743_v8  ;;  %1352 = vmatprep.mubr.f32.mxu0 %v1133_v39  ;;  %v1135_v53 = vmul.f32 %v1096_v61, %v979_v46 }
 0x23d   : > { %v1745_v41 = vpop.eup %1744  ;;  %v1137_v26 = vmul.f32 %v1098_v58, %v981_v44  ;;  %1764 = verf.f32 %v1032_v16  ;;  %1353 = vmatmul.mubr.f32.gmra.mxu0 %v1132_v3  ;;  %v988_v9 = vmul.f32 0.5, %v2841_v36  ;;  %v993_v57 = vmul.f32 0.5, %v2856_v15 }
 0x23e   : > { %v1747_v23 = vpop.eup %1746  ;;  %1766 = verf.f32 %v1031_v2  ;;  %v1136_v7 = vmul.f32 %v1097_v4, %v980_v51  ;;  %v1099_v32 = vadd.f32 1.0, %v1745_v41  ;;  %v992_v27 = vmul.f32 0.5, %v2862_v54 }
 0x23f   : > { %v1749_v13 = vpop.eup %1748  ;;  %v1101_v24 = vadd.f32 1.0, %v1747_v23  ;;  %1502 = vmatmul.mubr.f32.gmra.mxu1 %v1137_v26  ;;  %v991_v44 = vmul.f32 0.5, %v2854_v47 }
 0x240   : > { %v1100_v22 = vadd.f32 1.0, %v1749_v13  ;;  %1507 = vmatprep.mubr.f32.mxu1 %v1776_v55  ;;  %1358 = vmatprep.mubr.f32.mxu0 %v1136_v7  ;;  %v1138_v1 = vmul.f32 %v1099_v32, %v982_v63 }
 0x241   : > { %v1751_v35 = vpop.eup %1750  ;;  %v1140_v18 = vmul.f32 %v1101_v24, %v984_v34  ;;  %1359 = vmatmul.mubr.f32.gmra.mxu0 %v1135_v53 }
 0x242   : > { %v1753_v6 = vpop.eup %1752  ;;  %v1139_v21 = vmul.f32 %v1100_v22, %v983_v30  ;;  %v1102_v50 = vadd.f32 1.0, %v1751_v35 }
 0x243   : > { %v1755_v29 = vpop.eup %1754  ;;  %v1104_v10 = vadd.f32 1.0, %v1753_v6  ;;  %1508 = vmatmul.mubr.f32.gmra.mxu1 %v1140_v18 }
 0x244   : > { %v1103_v20 = vadd.f32 1.0, %v1755_v29  ;;  %1364 = vmatprep.mubr.f32.mxu0 %v1139_v21  ;;  %1513 = vmatprep.mubr.f32.mxu1 %v1776_v55  ;;  %v1141_v33 = vmul.f32 %v1102_v50, %v985_v52 }
 0x245   : > { %v1757_v31 = vpop.eup %1756  ;;  %v1143_v25 = vmul.f32 %v1104_v10, %v987_v0  ;;  %1365 = vmatmul.mubr.f32.gmra.mxu0 %v1138_v1 }
 0x246   : > { %v1759_v49 = vpop.eup %1758  ;;  %v1142_v48 = vmul.f32 %v1103_v20, %v986_v60  ;;  %v1105_v56 = vadd.f32 1.0, %v1757_v31 }
 0x247   : > { %v1761_v11 = vpop.eup %1760  ;;  %v1107_v59 = vadd.f32 1.0, %v1759_v49  ;;  %1514 = vmatmul.mubr.f32.gmra.mxu1 %v1143_v25 }
 0x248   : > { %v1106_v43 = vadd.f32 1.0, %v1761_v11  ;;  %1370 = vmatprep.mubr.f32.mxu0 %v1142_v48  ;;  %1519 = vmatprep.mubr.f32.mxu1 %v1776_v55  ;;  %v1144_v42 = vmul.f32 %v1105_v56, %v988_v9 }
 0x249   : > { %v1763_v28 = vpop.eup %1762  ;;  %v1146_v45 = vmul.f32 %v1107_v59, %v990_v12  ;;  %1371 = vmatmul.mubr.f32.gmra.mxu0 %v1141_v33 }
 0x24a   : > { %v1765_v40 = vpop.eup %1764  ;;  %v1145_v5 = vmul.f32 %v1106_v43, %v989_v37  ;;  %v1108_v38 = vadd.f32 1.0, %v1763_v28 }
 0x24b   : > { %v1767_v14 = vpop.eup %1766  ;;  %v1110_v17 = vadd.f32 1.0, %v1765_v40  ;;  %1520 = vmatmul.mubr.f32.gmra.mxu1 %v1146_v45 }
 0x24c   : > { %v1109_v19 = vadd.f32 1.0, %v1767_v14  ;;  %1376 = vmatprep.mubr.f32.mxu0 %v1145_v5  ;;  %1525 = vmatprep.mubr.f32.mxu1 %v1776_v55  ;;  %v1147_v58 = vmul.f32 %v1108_v38, %v991_v44 }
 0x24d   : > { %v1149_v39 = vmul.f32 %v1110_v17, %v993_v57  ;;  %1377 = vmatmul.mubr.f32.gmra.mxu0 %v1144_v42 }
 0x24e   : > { %v1148_v36 = vmul.f32 %v1109_v19, %v992_v27 }
 0x24f   : > { %1526 = vmatmul.mubr.f32.gmra.mxu1 %v1149_v39 }
 0x250   : > { %1382 = vmatprep.mubr.f32.mxu0 %v1148_v36 }
 0x251   : > { %1383 = vmatmul.mubr.f32.gmra.mxu0 %v1147_v58 }
 0x2de   : > { %v1455_v15 = vpop.f32.mrf.mxu1 }
 0x2e0   : > { %v1457_v16 = vpop.f32.mrf.mxu1  ;;  %v1312_v55 = vpop.f32.mrf.mxu0 }
 0x2e1   : > { %v1456_v47 = vadd.f32 %v1455_v15, %v1312_v55 }
 0x2e2   : > { %v1314_v54 = vpop.f32.mrf.mxu0 }
 0x2e3   : > { %1532 = vst [vmem:[%s2889_s12] sm:$0xff] %v1456_v47  ;;  %v1461_v62 = vpop.f32.mrf.mxu1  ;;  %v1458_v8 = vadd.f32 %v1457_v16, %v1314_v54 }
 0x2e5   : > { %1533 = vst.msk [vmem:[%s2889_s12 + $0x8] sm:$0xff] %vm259_vm0, %v1458_v8  ;;  %v1463_v3 = vpop.f32.mrf.mxu1  ;;  %v1318_v61 = vpop.f32.mrf.mxu0 }
 0x2e6   : > { %v1462_v2 = vadd.f32 %v1461_v62, %v1318_v61 }
 0x2e7   : > { %v1467_v41 = vpop.f32.mrf.mxu1  ;;  %v1320_v26 = vpop.f32.mrf.mxu0 }
 0x2e8   : > { %1534 = vst [vmem:[%s2889_s12 + $0x10] sm:$0xff] %v1462_v2  ;;  %v1464_v51 = vadd.f32 %v1463_v3, %v1320_v26 }
 0x2e9   : > { %v1469_v4 = vpop.f32.mrf.mxu1  ;;  %v1324_v23 = vpop.f32.mrf.mxu0 }
 0x2ea   : > { %1535 = vst.msk [vmem:[%s2889_s12 + $0x18] sm:$0xff] %vm259_vm0, %v1464_v51  ;;  %v1468_v46 = vadd.f32 %v1467_v41, %v1324_v23 }
 0x2eb   : > { %v1473_v13 = vpop.f32.mrf.mxu1  ;;  %v1326_v7 = vpop.f32.mrf.mxu0 }
 0x2ec   : > { %1536 = vst [vmem:[%s2889_s12 + $0x20] sm:$0xff] %v1468_v46  ;;  %v1470_v34 = vadd.f32 %v1469_v4, %v1326_v7 }
 0x2ed   : > { %v1475_v24 = vpop.f32.mrf.mxu1  ;;  %v1330_v53 = vpop.f32.mrf.mxu0 }
 0x2ee   : > { %1537 = vst.msk [vmem:[%s2889_s12 + $0x28] sm:$0xff] %vm259_vm0, %v1470_v34  ;;  %v1474_v32 = vadd.f32 %v1473_v13, %v1330_v53 }
 0x2ef   : > { %v1479_v30 = vpop.f32.mrf.mxu1  ;;  %v1332_v22 = vpop.f32.mrf.mxu0 }
 0x2f0   : > { %1538 = vst [vmem:[%s2889_s12 + $0x30] sm:$0xff] %v1474_v32  ;;  %v1476_v35 = vadd.f32 %v1475_v24, %v1332_v22 }
 0x2f1   : > { %v1481_v18 = vpop.f32.mrf.mxu1  ;;  %v1336_v6 = vpop.f32.mrf.mxu0 }
 0x2f2   : > { %1539 = vst.msk [vmem:[%s2889_s12 + $0x38] sm:$0xff] %vm259_vm0, %v1476_v35  ;;  %v1480_v63 = vadd.f32 %v1479_v30, %v1336_v6 }
 0x2f3   : > { %v1485_v21 = vpop.f32.mrf.mxu1  ;;  %v1338_v29 = vpop.f32.mrf.mxu0 }
 0x2f4   : > { %1540 = vst [vmem:[%s2889_s12 + $0x40] sm:$0xff] %v1480_v63  ;;  %v1482_v0 = vadd.f32 %v1481_v18, %v1338_v29 }
 0x2f5   : > { %v1487_v10 = vpop.f32.mrf.mxu1  ;;  %v1342_v1 = vpop.f32.mrf.mxu0 }
 0x2f6   : > { %1541 = vst.msk [vmem:[%s2889_s12 + $0x48] sm:$0xff] %vm259_vm0, %v1482_v0  ;;  %v1486_v50 = vadd.f32 %v1485_v21, %v1342_v1 }
 0x2f7   : > { %v1491_v60 = vpop.f32.mrf.mxu1  ;;  %v1344_v20 = vpop.f32.mrf.mxu0 }
 0x2f8   : > { %1542 = vst [vmem:[%s2889_s12 + $0x50] sm:$0xff] %v1486_v50  ;;  %v1488_v31 = vadd.f32 %v1487_v10, %v1344_v20 }
 0x2f9   : > { %v1493_v25 = vpop.f32.mrf.mxu1  ;;  %v1348_v49 = vpop.f32.mrf.mxu0 }
 0x2fa   : > { %1543 = vst.msk [vmem:[%s2889_s12 + $0x58] sm:$0xff] %vm259_vm0, %v1488_v31  ;;  %v1492_v52 = vadd.f32 %v1491_v60, %v1348_v49 }
 0x2fb   : > { %v1497_v48 = vpop.f32.mrf.mxu1  ;;  %v1350_v11 = vpop.f32.mrf.mxu0 }
 0x2fc   : > { %1544 = vst [vmem:[%s2889_s12 + $0x60] sm:$0xff] %v1492_v52  ;;  %v1494_v12 = vadd.f32 %v1493_v25, %v1350_v11 }
 0x2fd   : > { %v1499_v59 = vpop.f32.mrf.mxu1  ;;  %v1354_v33 = vpop.f32.mrf.mxu0 }
 0x2fe   : > { %1545 = vst.msk [vmem:[%s2889_s12 + $0x68] sm:$0xff] %vm259_vm0, %v1494_v12  ;;  %v1498_v56 = vadd.f32 %v1497_v48, %v1354_v33 }
 0x2ff   : > { %v1503_v37 = vpop.f32.mrf.mxu1  ;;  %v1356_v43 = vpop.f32.mrf.mxu0 }
 0x300   : > { %1546 = vst [vmem:[%s2889_s12 + $0x70] sm:$0xff] %v1498_v56  ;;  %v1500_v28 = vadd.f32 %v1499_v59, %v1356_v43 }
 0x301   : > { %v1505_v45 = vpop.f32.mrf.mxu1  ;;  %v1360_v40 = vpop.f32.mrf.mxu0 }
 0x302   : > { %1547 = vst.msk [vmem:[%s2889_s12 + $0x78] sm:$0xff] %vm259_vm0, %v1500_v28  ;;  %v1504_v9 = vadd.f32 %v1503_v37, %v1360_v40 }
 0x303   : > { %v1509_v5 = vpop.f32.mrf.mxu1  ;;  %v1362_v14 = vpop.f32.mrf.mxu0 }
 0x304   : > { %1548 = vst [vmem:[%s2889_s12 + $0x80] sm:$0xff] %v1504_v9  ;;  %v1506_v57 = vadd.f32 %v1505_v45, %v1362_v14 }
 0x305   : > { %v1511_v17 = vpop.f32.mrf.mxu1  ;;  %v1366_v42 = vpop.f32.mrf.mxu0 }
 0x306   : > { %1549 = vst.msk [vmem:[%s2889_s12 + $0x88] sm:$0xff] %vm259_vm0, %v1506_v57  ;;  %v1510_v38 = vadd.f32 %v1509_v5, %v1366_v42 }
 0x307   : > { %v1515_v27 = vpop.f32.mrf.mxu1  ;;  %v1368_v19 = vpop.f32.mrf.mxu0 }
 0x308   : > { %1550 = vst [vmem:[%s2889_s12 + $0x90] sm:$0xff] %v1510_v38  ;;  %v1512_v39 = vadd.f32 %v1511_v17, %v1368_v19 }
 0x309   : > { %v1517_v44 = vpop.f32.mrf.mxu1  ;;  %v1372_v36 = vpop.f32.mrf.mxu0 }
 0x30a   : > { %1551 = vst.msk [vmem:[%s2889_s12 + $0x98] sm:$0xff] %vm259_vm0, %v1512_v39  ;;  %v1516_v58 = vadd.f32 %v1515_v27, %v1372_v36 }
 0x30b   : > { %v1521_v15 = vpop.f32.mrf.mxu1  ;;  %v1374_v16 = vpop.f32.mrf.mxu0 }
 0x30c   : > { %1552 = vst [vmem:[%s2889_s12 + $0xa0] sm:$0xff] %v1516_v58  ;;  %v1518_v55 = vadd.f32 %v1517_v44, %v1374_v16 }
 0x30d   : > { %v1523_v47 = vpop.f32.mrf.mxu1  ;;  %v1378_v54 = vpop.f32.mrf.mxu0 }
 0x30e   : > { %1553 = vst.msk [vmem:[%s2889_s12 + $0xa8] sm:$0xff] %vm259_vm0, %v1518_v55  ;;  %v1522_v62 = vadd.f32 %v1521_v15, %v1378_v54 }
 0x30f   : > { %v1527_v8 = vpop.f32.mrf.mxu1  ;;  %v1380_v3 = vpop.f32.mrf.mxu0 }
 0x310   : > { %1554 = vst [vmem:[%s2889_s12 + $0xb0] sm:$0xff] %v1522_v62  ;;  %v1524_v61 = vadd.f32 %v1523_v47, %v1380_v3 }
 0x311   : > { %v1384_v2 = vpop.f32.mrf.mxu0  ;;  %v1529_v26 = vpop.f32.mrf.mxu1 }
 0x312   : > { %1555 = vst.msk [vmem:[%s2889_s12 + $0xb8] sm:$0xff] %vm259_vm0, %v1524_v61  ;;  %v1528_v41 = vadd.f32 %v1527_v8, %v1384_v2 }
 0x313   : > { %v1386_v51 = vpop.f32.mrf.mxu0 }
 0x314   : > { %1556 = vst [vmem:[%s2889_s12 + $0xc0] sm:$0xff] %v1528_v41  ;;  %v1530_v4 = vadd.f32 %v1529_v26, %v1386_v51 }
 0x316   : > { %1557 = vst.msk [vmem:[%s2889_s12 + $0xc8] sm:$0xff] %vm259_vm0, %v1530_v4 }
 0x317 PF: > { %s15_s18 = sadd.s32 1, %s1774_s18  }
 0x318   : > { %p12_p4 = scmp.ge.s32.totalorder %s15_s18, 6  }
 0x31a   :  { %14 = sbr.rel (!%p12_p4) target bundleno = 1 (0x1), region = 70 }

</bundles_post_ra>
